<compile_context>
chip_gen: v7x
topology: tpu7x:2x2x1
jax: 0.10.0
libtpu: 0.0.40
codegen_flags: <defaults>
</compile_context>

<pallas_src>
import math

import jax
import jax.numpy as jnp
from jax.experimental import pallas as pl
from jax.experimental.pallas import tpu as pltpu


# ------------------------- Pallas kernel: fused gather + GRU gates -------------------------

def _mat_gru_cell_kernel(idxscale_ref,  # (2, TBC)       f32   row0: global top-k idx (as f32), row1: tanh(score)
                         zt_ref,        # (rows, TBN)    f32   prev_Z slab block  [r, b*N+n] = Z_b[n, r]
                         q_ref,         # (rows, TBC)    f32   prev_Q slab block  [r, b*cols+c] = Q_b[r, c]
                         w_ref,         # (7r, r)        bf16  [W_u;W_r;W_h; U_u;U_r;0; U_h]
                         b_ref,         # (3r, TBC)      f32   [b_u;b_r;b_h] tiled TB times along lanes
                         out_ref):      # (rows, TBC)    f32   new_Q slab block
    f32 = jnp.float32
    bf16 = jnp.bfloat16
    rows, tbc = out_ref.shape
    tbn = zt_ref.shape[1]

    # ---- fused TopK row-gather + tanh scaling as a one-hot matmul (no XLA gather) ----
    # sel[g, j] = tanh(score_j) if (block-local node index g) == (global idx_j - block offset)
    g = jax.lax.broadcasted_iota(jnp.int32, (tbn, tbc), 0)
    tgt = idxscale_ref[0:1, :].astype(jnp.int32) - pl.program_id(0) * tbn
    scale = idxscale_ref[1:2, :]
    sel = jnp.where(g == tgt, scale, 0.0).astype(bf16)                    # (tbn, tbc)
    # z[r, b*cols+c] = prev_Z_b[idx_{b,c}, r] * tanh(score_{b,c})
    z = jnp.dot(zt_ref[...].astype(bf16), sel, preferred_element_type=f32)  # (rows, tbc)

    q = q_ref[...]                                                        # (rows, tbc) f32

    # ---- stacked gate pre-activations: two MXU pushes, no VMEM scratch roundtrip ----
    # pre = [W_u;W_r;W_h] @ z + [U_u;U_r;0] @ q + [b_u;b_r;b_h]
    pre = (jnp.dot(w_ref[0:3 * rows, :], z.astype(bf16), preferred_element_type=f32)
           + jnp.dot(w_ref[3 * rows:6 * rows, :], q.astype(bf16), preferred_element_type=f32)
           + b_ref[...])                                                  # (3r, tbc)

    upd = jax.nn.sigmoid(pre[0:rows, :])          # sigmoid(W_u z + U_u q + b_u)
    rst = jax.nn.sigmoid(pre[rows:2 * rows, :])   # sigmoid(W_r z + U_r q + b_r)

    # candidate: tanh(W_h z + U_h (reset * q) + b_h)
    h_cap = jnp.tanh(pre[2 * rows:3 * rows, :]
                     + jnp.dot(w_ref[6 * rows:7 * rows, :], (rst * q).astype(bf16),
                               preferred_element_type=f32))

    out_ref[...] = (1.0 - upd) * q + upd * h_cap


def _pick_tb(batch, cols, n_nodes):
    # Largest batch tile (capped at 16) whose Q/out and Z block last dims are lane-dense
    # (multiples of 128). Fall back to a single full-extent block (always a legal BlockSpec).
    for tb in range(min(batch, 16), 0, -1):
        if batch % tb == 0 and (tb * cols) % 128 == 0 and (tb * n_nodes) % 128 == 0:
            return tb
    return batch


def gru_cell_batched_pallas(idxscale, zt_slab, q_slab, w_pack, b_tiled, *, rows, cols, tb, n_nodes):
    bcols = q_slab.shape[1]
    tbc = tb * cols
    tbn = tb * n_nodes
    grid = (bcols // tbc,)
    return pl.pallas_call(
        _mat_gru_cell_kernel,
        out_shape=jax.ShapeDtypeStruct((rows, bcols), jnp.float32),
        grid=grid,
        in_specs=[
            pl.BlockSpec((2, tbc), lambda i: (0, i)),       # packed idx+scale
            pl.BlockSpec((rows, tbn), lambda i: (0, i)),    # prev_Z slab
            pl.BlockSpec((rows, tbc), lambda i: (0, i)),    # prev_Q slab
            pl.BlockSpec(w_pack.shape, lambda i: (0, 0)),   # fused weights: resident
            pl.BlockSpec(b_tiled.shape, lambda i: (0, 0)),  # fused bias: resident
        ],
        out_specs=pl.BlockSpec((rows, tbc), lambda i: (0, i)),
        input_output_aliases={2: 0},      # new_Q slab reuses prev_Q slab's buffer
        compiler_params=pltpu.CompilerParams(
            dimension_semantics=("parallel",)),  # shard batch tiles across v7x TensorCores
    )(idxscale, zt_slab, q_slab, w_pack, b_tiled)


# ------------------------- TopK index selection (plain JAX glue) -------------------------

def choose_topk_indices_batched(node_embs, mask, scorer, k):
    # node_embs: (B, N, rows)  mask: (B, N, 1)  scorer: (rows, 1)
    scores = (node_embs @ scorer)[..., 0] / jnp.linalg.norm(scorer) + mask[..., 0]  # (B, N)
    vals, idx = jax.lax.top_k(scores, k)                                            # (B, k)
    # TODO(synk): torch.topk + boolean-filtered pad_with_last_val has no clean Pallas
    # equivalent; lax.top_k + padding stays in plain JAX (only exact -inf counts as masked).
    valid = vals > -jnp.inf
    last = jnp.maximum(jnp.sum(valid.astype(jnp.int32), axis=-1) - 1, 0)            # (B,)
    idx_last = jnp.take_along_axis(idx, last[:, None], axis=-1)
    val_last = jnp.take_along_axis(vals, last[:, None], axis=-1)
    idx = jnp.where(valid, idx, idx_last)
    vals = jnp.where(valid, vals, val_last)
    return idx.astype(jnp.int32), jnp.tanh(vals)


# ------------------------- mat_GRU_cell forward (batched + single-cell) -------------------------

def mat_gru_cell_forward_batched(prev_Q, prev_Z, mask, params):
    # prev_Q: (B, rows, cols)   prev_Z: (B, N, rows)   mask: (B, N, 1)  -> (B, rows, cols)
    B, rows, cols = prev_Q.shape
    N = prev_Z.shape[1]
    idx, scale = choose_topk_indices_batched(prev_Z, mask, params["scorer"], cols)   # (B, cols)

    tb = _pick_tb(B, cols, N)

    # --- layout plumbing (amortized over the batch): lane-dense slabs, batch on the lane axis ---
    q_slab = jnp.transpose(prev_Q, (1, 0, 2)).reshape(rows, B * cols)
    zt_slab = jnp.transpose(prev_Z, (2, 0, 1)).reshape(rows, B * N)
    # global node index (cell*N + idx) fits exactly in f32 for B*N < 2**24
    gidx = (idx + jnp.arange(B, dtype=jnp.int32)[:, None] * N).reshape(-1)
    idxscale = jnp.stack([gidx.astype(jnp.float32), scale.reshape(-1)], axis=0)      # (2, B*cols)
    b_tiled = jnp.tile(params["big_b"], (1, tb))                                     # (3r, tb*cols)

    out_slab = gru_cell_batched_pallas(idxscale, zt_slab, q_slab, params["w_pack"], b_tiled,
                                       rows=rows, cols=cols, tb=tb, n_nodes=N)
    return out_slab.reshape(rows, B, cols).transpose(1, 0, 2)


def mat_gru_cell_forward(prev_Q, prev_Z, mask, params):
    # Original single-cell module semantics (B = 1).
    return mat_gru_cell_forward_batched(prev_Q[None], prev_Z[None], mask[None], params)[0]


# ------------------------- pure-JAX reference (original f32 semantics) -------------------------

def mat_gru_cell_reference(prev_Q, prev_Z, mask, p):
    cols = prev_Q.shape[1]
    idx, scale = choose_topk_indices_batched(prev_Z[None], mask[None], p["scorer"], cols)
    idx, scale = idx[0], scale[0]
    z = (prev_Z[idx] * scale[:, None]).T
    upd = jax.nn.sigmoid(p["W_u"] @ z + p["U_u"] @ prev_Q + p["b_u"])
    rst = jax.nn.sigmoid(p["W_r"] @ z + p["U_r"] @ prev_Q + p["b_r"])
    h_cap = jnp.tanh(p["W_h"] @ z + p["U_h"] @ (rst * prev_Q) + p["b_h"])
    return (1.0 - upd) * prev_Q + upd * h_cap


# ------------------------- deterministic parameter init -------------------------

def init_params(key, rows, cols):
    # bf16 sublane packing of the fused weight-slab slices (offsets 3r, 6r) needs rows % 16 == 0.
    assert rows % 16 == 0
    keys = jax.random.split(key, 7)
    stdv = 1.0 / math.sqrt(rows)   # W/U: 1/sqrt(size(1)); scorer: 1/sqrt(size(0)); both = rows

    def u(k, shape, s):
        return jax.random.uniform(k, shape, jnp.float32, minval=-s, maxval=s)

    W_u, U_u = u(keys[0], (rows, rows), stdv), u(keys[1], (rows, rows), stdv)
    W_r, U_r = u(keys[2], (rows, rows), stdv), u(keys[3], (rows, rows), stdv)
    W_h, U_h = u(keys[4], (rows, rows), stdv), u(keys[5], (rows, rows), stdv)
    b_u = jnp.zeros((rows, cols), jnp.float32)
    b_r = jnp.zeros((rows, cols), jnp.float32)
    b_h = jnp.zeros((rows, cols), jnp.float32)
    scorer = u(keys[6], (rows, 1), stdv)

    # ONE fused bf16 weight slab (single resident DMA):
    #   rows 0:3r  -> [W_u; W_r; W_h]        (x-path, multiplies z)
    #   rows 3r:6r -> [U_u; U_r; 0]          (hidden-path, multiplies q; h~'s slot is zero)
    #   rows 6r:7r -> U_h                    (multiplies reset*q)
    zero = jnp.zeros((rows, rows), jnp.float32)
    w_pack = jnp.concatenate([W_u, W_r, W_h, U_u, U_r, zero, U_h], axis=0).astype(jnp.bfloat16)
    big_b = jnp.concatenate([b_u, b_r, b_h], axis=0)     # (3r, cols) f32

    return {
        # original f32 params (reference path)
        "W_u": W_u, "U_u": U_u, "b_u": b_u,
        "W_r": W_r, "U_r": U_r, "b_r": b_r,
        "W_h": W_h, "U_h": U_h, "b_h": b_h,
        "scorer": scorer,
        # fused params consumed by the Pallas kernel
        "w_pack": w_pack,      # (7*rows, rows) bf16
        "big_b": big_b,        # (3*rows, cols) f32
    }


if __name__ == "__main__":
    rows, cols, num_nodes, batch = 32, 16, 64, 32   # args.rows=32, args.cols=16 (= k); 32 cells batched

    key = jax.random.PRNGKey(0)
    kp, kq, kz = jax.random.split(key, 3)
    params = init_params(kp, rows, cols)

    prev_Q = jax.random.normal(kq, (batch, rows, cols), jnp.float32)
    prev_Z = jax.random.normal(kz, (batch, num_nodes, rows), jnp.float32)
    mask = jnp.zeros((batch, num_nodes, 1), jnp.float32)   # all nodes eligible

    # batched path: one pallas_call, grid over batch tiles, lane-dense blocks
    new_Q = jax.jit(mat_gru_cell_forward_batched)(prev_Q, prev_Z, mask, params)
    jax.block_until_ready(new_Q)
    assert new_Q.shape == (batch, rows, cols) and new_Q.dtype == jnp.float32

    # single-cell module-semantics path (B=1; block shapes fall back to full-extent)
    new_Q0 = jax.jit(mat_gru_cell_forward)(prev_Q[0], prev_Z[0], mask[0], params)
    jax.block_until_ready(new_Q0)
    assert new_Q0.shape == (rows, cols)

    # correctness vs. the original f32 math (loose tol: bf16 MXU operands)
    ref = jax.vmap(lambda q, z, m: mat_gru_cell_reference(q, z, m, params))(prev_Q, prev_Z, mask)
    err_b = float(jnp.max(jnp.abs(new_Q - ref)))
    err_1 = float(jnp.max(jnp.abs(new_Q0 - ref[0])))
    assert err_b < 1e-1 and err_1 < 1e-1, (err_b, err_1)

    print("KERNEL_OK")
</pallas_src>

<mosaic_0001>
module attributes {stable_mosaic.version = 11 : i64} {
  func.func @_mat_gru_cell_kernel(%arg0: i32, %arg1: memref<2x256xf32, #tpu.memory_space<vmem>>, %arg2: memref<32x1024xf32, #tpu.memory_space<vmem>>, %arg3: memref<32x256xf32, #tpu.memory_space<vmem>>, %arg4: memref<224x32xbf16, #tpu.memory_space<vmem>>, %arg5: memref<96x256xf32, #tpu.memory_space<vmem>>, %arg6: memref<32x256xf32, #tpu.memory_space<vmem>>) attributes {dimension_semantics = [#tpu.dimension_semantics<parallel>], iteration_bounds = array<i64: 2>, scalar_prefetch = 0 : i64, scratch_operands = 0 : i64, tpu.core_type = #tpu.core_type<tc>, window_params = [{transform_indices = @transform_0, window_bounds = array<i64: 2, 256>}, {transform_indices = @transform_1, window_bounds = array<i64: 32, 1024>}, {transform_indices = @transform_2, window_bounds = array<i64: 32, 256>}, {pipeline_mode = #tpu.pipeline_mode<synchronous>, transform_indices = @transform_3, window_bounds = array<i64: 224, 32>}, {pipeline_mode = #tpu.pipeline_mode<synchronous>, transform_indices = @transform_4, window_bounds = array<i64: 96, 256>}, {transform_indices = @transform_5, window_bounds = array<i64: 32, 256>}]} {
    %0 = tpu.iota {dimensions = array<i32: 0>} : vector<1024x256xi32>
    %c0 = arith.constant 0 : index
    %c0_0 = arith.constant 0 : index
    %1 = vector.load %arg1[%c0, %c0_0] : memref<2x256xf32, #tpu.memory_space<vmem>>, vector<1x256xf32>
    %2 = arith.fptosi %1 : vector<1x256xf32> to vector<1x256xi32>
    %c1024_i32 = arith.constant 1024 : i32
    %3 = arith.muli %arg0, %c1024_i32 : i32
    %4 = vector.broadcast %3 : i32 to vector<1x256xi32>
    %5 = arith.subi %2, %4 : vector<1x256xi32>
    %c1 = arith.constant 1 : index
    %c0_1 = arith.constant 0 : index
    %6 = vector.load %arg1[%c1, %c0_1] : memref<2x256xf32, #tpu.memory_space<vmem>>, vector<1x256xf32>
    %7 = vector.broadcast %5 : vector<1x256xi32> to vector<1024x256xi32>
    %8 = arith.cmpi eq, %0, %7 : vector<1024x256xi32>
    %cst = arith.constant 0.000000e+00 : f32
    %9 = vector.shape_cast %6 : vector<1x256xf32> to vector<1x256xf32>
    %10 = vector.broadcast %9 : vector<1x256xf32> to vector<1024x256xf32>
    %11 = vector.broadcast %cst : f32 to vector<1024x256xf32>
    %12 = arith.select %8, %10, %11 : vector<1024x256xi1>, vector<1024x256xf32>
    %13 = arith.truncf %12 : vector<1024x256xf32> to vector<1024x256xbf16>
    %c0_2 = arith.constant 0 : index
    %c0_3 = arith.constant 0 : index
    %14 = vector.load %arg2[%c0_2, %c0_3] : memref<32x1024xf32, #tpu.memory_space<vmem>>, vector<32x1024xf32>
    %15 = arith.truncf %14 : vector<32x1024xf32> to vector<32x1024xbf16>
    %cst_4 = arith.constant dense<0.000000e+00> : vector<32x256xf32>
    %16 = tpu.matmul %15, %13, %cst_4 {dimension_numbers = #tpu.dot_dimension_numbers<[1], [0], [0], [1], [0, 0, 1, 1], [], []>} : vector<32x1024xbf16>, vector<1024x256xbf16>, vector<32x256xf32> -> vector<32x256xf32>
    %c0_5 = arith.constant 0 : index
    %c0_6 = arith.constant 0 : index
    %17 = vector.load %arg3[%c0_5, %c0_6] : memref<32x256xf32, #tpu.memory_space<vmem>>, vector<32x256xf32>
    %c0_7 = arith.constant 0 : index
    %c0_8 = arith.constant 0 : index
    %18 = vector.load %arg4[%c0_7, %c0_8] : memref<224x32xbf16, #tpu.memory_space<vmem>>, vector<96x32xbf16>
    %19 = arith.truncf %16 : vector<32x256xf32> to vector<32x256xbf16>
    %cst_9 = arith.constant dense<0.000000e+00> : vector<96x256xf32>
    %20 = tpu.matmul %18, %19, %cst_9 {dimension_numbers = #tpu.dot_dimension_numbers<[1], [0], [0], [1], [0, 0, 1, 1], [], []>} : vector<96x32xbf16>, vector<32x256xbf16>, vector<96x256xf32> -> vector<96x256xf32>
    %c96 = arith.constant 96 : index
    %c0_10 = arith.constant 0 : index
    %21 = vector.load %arg4[%c96, %c0_10] : memref<224x32xbf16, #tpu.memory_space<vmem>>, vector<96x32xbf16>
    %22 = arith.truncf %17 : vector<32x256xf32> to vector<32x256xbf16>
    %cst_11 = arith.constant dense<0.000000e+00> : vector<96x256xf32>
    %23 = tpu.matmul %21, %22, %cst_11 {dimension_numbers = #tpu.dot_dimension_numbers<[1], [0], [0], [1], [0, 0, 1, 1], [], []>} : vector<96x32xbf16>, vector<32x256xbf16>, vector<96x256xf32> -> vector<96x256xf32>
    %24 = arith.addf %20, %23 : vector<96x256xf32>
    %c0_12 = arith.constant 0 : index
    %c0_13 = arith.constant 0 : index
    %25 = vector.load %arg5[%c0_12, %c0_13] : memref<96x256xf32, #tpu.memory_space<vmem>>, vector<96x256xf32>
    %26 = arith.addf %24, %25 : vector<96x256xf32>
    %27 = vector.extract_strided_slice %26 {offsets = [0, 0], sizes = [32, 256], strides = [1, 1]} : vector<96x256xf32> to vector<32x256xf32>
    %28 = arith.negf %27 : vector<32x256xf32>
    %29 = math.exp %28 : vector<32x256xf32>
    %cst_14 = arith.constant 1.000000e+00 : f32
    %30 = vector.broadcast %cst_14 : f32 to vector<32x256xf32>
    %31 = arith.addf %30, %29 : vector<32x256xf32>
    %32 = arith.divf %30, %31 : vector<32x256xf32>
    %33 = vector.extract_strided_slice %26 {offsets = [32, 0], sizes = [32, 256], strides = [1, 1]} : vector<96x256xf32> to vector<32x256xf32>
    %34 = arith.negf %33 : vector<32x256xf32>
    %35 = math.exp %34 : vector<32x256xf32>
    %cst_15 = arith.constant 1.000000e+00 : f32
    %36 = vector.broadcast %cst_15 : f32 to vector<32x256xf32>
    %37 = arith.addf %36, %35 : vector<32x256xf32>
    %38 = arith.divf %36, %37 : vector<32x256xf32>
    %39 = vector.extract_strided_slice %26 {offsets = [64, 0], sizes = [32, 256], strides = [1, 1]} : vector<96x256xf32> to vector<32x256xf32>
    %c192 = arith.constant 192 : index
    %c0_16 = arith.constant 0 : index
    %40 = vector.load %arg4[%c192, %c0_16] : memref<224x32xbf16, #tpu.memory_space<vmem>>, vector<32x32xbf16>
    %41 = arith.mulf %38, %17 : vector<32x256xf32>
    %42 = arith.truncf %41 : vector<32x256xf32> to vector<32x256xbf16>
    %cst_17 = arith.constant dense<0.000000e+00> : vector<32x256xf32>
    %43 = tpu.matmul %40, %42, %cst_17 {dimension_numbers = #tpu.dot_dimension_numbers<[1], [0], [0], [1], [0, 0, 1, 1], [], []>} : vector<32x32xbf16>, vector<32x256xbf16>, vector<32x256xf32> -> vector<32x256xf32>
    %44 = arith.addf %39, %43 : vector<32x256xf32>
    %45 = math.tanh %44 : vector<32x256xf32>
    %cst_18 = arith.constant 1.000000e+00 : f32
    %46 = vector.broadcast %cst_18 : f32 to vector<32x256xf32>
    %47 = arith.subf %46, %32 : vector<32x256xf32>
    %48 = arith.mulf %47, %17 : vector<32x256xf32>
    %49 = arith.mulf %32, %45 : vector<32x256xf32>
    %50 = arith.addf %48, %49 : vector<32x256xf32>
    %c0_19 = arith.constant 0 : index
    %c0_20 = arith.constant 0 : index
    %51 = vector.load %arg6[%c0_19, %c0_20] : memref<32x256xf32, #tpu.memory_space<vmem>>, vector<32x256xf32>
    tpu.vector_store %arg6[%c0_19, %c0_20], %50 {strides = array<i32>} : memref<32x256xf32, #tpu.memory_space<vmem>>, vector<32x256xf32>,
    return
  }
  func.func @transform_0(%arg0: i32) -> (i32, i32) {
    %c0_i32 = arith.constant 0 : i32
    %c0_i32_0 = arith.constant 0 : i32
    return %c0_i32, %arg0 : i32, i32
  }
  func.func @transform_1(%arg0: i32) -> (i32, i32) {
    %c0_i32 = arith.constant 0 : i32
    %c0_i32_0 = arith.constant 0 : i32
    return %c0_i32, %arg0 : i32, i32
  }
  func.func @transform_2(%arg0: i32) -> (i32, i32) {
    %c0_i32 = arith.constant 0 : i32
    %c0_i32_0 = arith.constant 0 : i32
    return %c0_i32, %arg0 : i32, i32
  }
  func.func @transform_3(%arg0: i32) -> (i32, i32) {
    %c0_i32 = arith.constant 0 : i32
    %c0_i32_0 = arith.constant 0 : i32
    %c0_i32_1 = arith.constant 0 : i32
    return %c0_i32, %c0_i32_0 : i32, i32
  }
  func.func @transform_4(%arg0: i32) -> (i32, i32) {
    %c0_i32 = arith.constant 0 : i32
    %c0_i32_0 = arith.constant 0 : i32
    %c0_i32_1 = arith.constant 0 : i32
    return %c0_i32, %c0_i32_0 : i32, i32
  }
  func.func @transform_5(%arg0: i32) -> (i32, i32) {
    %c0_i32 = arith.constant 0 : i32
    %c0_i32_0 = arith.constant 0 : i32
    return %c0_i32, %arg0 : i32, i32
  }
}

</mosaic_0001>

<bundles_post_ra>
// kernel: mat_gru_cell_forward_batched.1
= control target key start
LH: loop header
LB: loop body
LE: loop exit
PB: predicated region body
PF: predicated region fallthrough
CT: control target
= control target key end

     0   :  { %s2865_s18 = smov 0   ;;  %s2867_s19 = smov 0   ;;  %s4206_s0 = inlined_call_operand.vmem [shape: f32[2,512], index: 0, kind: input, shape index: {}]   ;;  %s4207_s1 = inlined_call_operand.vmem [shape: f32[32,2048], index: 1, kind: input, shape index: {}]   ;;  %s4208_s2 = inlined_call_operand.vmem [shape: f32[32,512], index: 2, kind: input, shape index: {}, may-alias: {2,5}]   ;;  %s4209_s3 = inlined_call_operand.vmem [shape: bf16[224,32], index: 3, kind: input, shape index: {}]   ;;  %s4210_s4 = inlined_call_operand.vmem [shape: f32[96,256], index: 4, kind: input, shape index: {}]   ;;  %s4211_s5 = inlined_call_operand.vmem [shape: f32[32,512], index: 5, kind: output, shape index: {}, may-alias: {2,5}]  }
   0x1   :  { %s2869_s20 = smov 0  }
   0x2 LB: > { %s2881_s21 = sadd.s32 4294967295, %s2832_s20   ;;  %s2884_s22 = sadd.s32 1, %s2832_s20   ;;  %s2832_s20 = sphi %s2869_s20, %s4270_s20   ;;  %s2828_s19 = sphi %s2867_s19, %s4269_s19   ;;  %s2824_s18 = sphi %s2865_s18, %s4268_s18  }
   0x3   : > { %s45_s23 = ssub.s32 %s2832_s20, %s2884_s22  ;;  %s48_s24 = sadd.s32 1, %s2828_s19 }
   0x4   : > { %p46_p0 = scmp.eq.s32.totalorder %s45_s23, 0  ;;  %p55_p1 = scmp.ne.s32.totalorder %s2828_s19, %s2824_s18 }
   0x5   : > { %p56_p2 = scmp.eq.s32.totalorder %s2832_s20, 0  ;;  %p153_p3 = scmp.eq.s32.totalorder %s2881_s21, 1 }
   0x6   : > { %s2894_s25 = scalar_select %p46_p0, %s2828_s19, %s48_s24  }
   0x7   : > { %p2896_p4 = por %p56_p2, %p55_p1  ;;  %p2900_p5 = por %p153_p3, %p55_p1 }
   0x8   : > { %p2174_p6 = scmp.ge.s32.totalorder %s2832_s20, 2 }
   0xa   : > { %181 = sbr.rel (%p2174_p6) target bundleno = 45 (0x2d), region = 24 }
  0x11   : > { %193 = sbr.rel (!%p2896_p4) target bundleno = 37 (0x25), region = 32  ;;  %s195_s28 = sand.u32 (%p2896_p4), 1, %s2828_s19  }
  0x12   : > { %s2622_s29 = sshll.u32 (%p2896_p4), %s2832_s20, 6  ;;  %s2175_s30 = sshll.u32 (%p2896_p4), %s195_s28, 8 }
  0x13   : > { %s2912_s8 = scalar_lea.vmem (%p2896_p4), %s4207_s1, %s2622_s29  ;;  %s2917_s9 = scalar_lea.vmem (%p2896_p4), [#allocation2], %s2175_s30 }
  0x14   : > { %v213_v0 = vld [vmem:[%s2912_s8] sm:$0xff] (%p2896_p4)  ;;  %v215_v1 = vld [vmem:[%s2912_s8 + $0x8] sm:$0xff] (%p2896_p4)  ;;  %v217_v2 = vld [vmem:[%s2912_s8 + $0x10] sm:$0xff] (%p2896_p4) }
  0x15   : > { %214 = vst [vmem:[%s2917_s9] sm:$0xff] (%p2896_p4), %v213_v0  ;;  %216 = vst [vmem:[%s2917_s9 + $0x8] sm:$0xff] (%p2896_p4), %v215_v1  ;;  %v219_v3 = vld [vmem:[%s2912_s8 + $0x18] sm:$0xff] (%p2896_p4)  ;;  %v221_v4 = vld [vmem:[%s2912_s8 + $0x20] sm:$0xff] (%p2896_p4) }
  0x16   : > { %218 = vst [vmem:[%s2917_s9 + $0x10] sm:$0xff] (%p2896_p4), %v217_v2  ;;  %v223_v5 = vld [vmem:[%s2912_s8 + $0x28] sm:$0xff] (%p2896_p4)  ;;  %220 = vst [vmem:[%s2917_s9 + $0x18] sm:$0xff] (%p2896_p4), %v219_v3  ;;  %v225_v6 = vld [vmem:[%s2912_s8 + $0x30] sm:$0xff] (%p2896_p4) }
  0x17   : > { %222 = vst [vmem:[%s2917_s9 + $0x20] sm:$0xff] (%p2896_p4), %v221_v4  ;;  %224 = vst [vmem:[%s2917_s9 + $0x28] sm:$0xff] (%p2896_p4), %v223_v5  ;;  %v227_v7 = vld [vmem:[%s2912_s8 + $0x38] sm:$0xff] (%p2896_p4)  ;;  %v229_v8 = vld [vmem:[%s2912_s8 + $0x80] sm:$0xff] (%p2896_p4) }
  0x18   : > { %226 = vst [vmem:[%s2917_s9 + $0x30] sm:$0xff] %v225_v6  ;;  %228 = vst [vmem:[%s2917_s9 + $0x38] sm:$0xff] %v227_v7  ;;  %v231_v9 = vld [vmem:[%s2912_s8 + $0x88] sm:$0xff]  ;;  %v233_v10 = vld [vmem:[%s2912_s8 + $0x90] sm:$0xff] }
  0x19   : > { %230 = vst [vmem:[%s2917_s9 + $0x40] sm:$0xff] %v229_v8  ;;  %v235_v11 = vld [vmem:[%s2912_s8 + $0x98] sm:$0xff]  ;;  %232 = vst [vmem:[%s2917_s9 + $0x48] sm:$0xff] %v231_v9  ;;  %v237_v12 = vld [vmem:[%s2912_s8 + $0xa0] sm:$0xff] }
  0x1a   : > { %234 = vst [vmem:[%s2917_s9 + $0x50] sm:$0xff] %v233_v10  ;;  %236 = vst [vmem:[%s2917_s9 + $0x58] sm:$0xff] %v235_v11  ;;  %v239_v13 = vld [vmem:[%s2912_s8 + $0xa8] sm:$0xff]  ;;  %v241_v14 = vld [vmem:[%s2912_s8 + $0xb0] sm:$0xff] }
  0x1b   : > { %238 = vst [vmem:[%s2917_s9 + $0x60] sm:$0xff] %v237_v12  ;;  %240 = vst [vmem:[%s2917_s9 + $0x68] sm:$0xff] %v239_v13  ;;  %v243_v15 = vld [vmem:[%s2912_s8 + $0xb8] sm:$0xff]  ;;  %v245_v16 = vld [vmem:[%s2912_s8 + $0x100] sm:$0xff] }
  0x1c   : > { %242 = vst [vmem:[%s2917_s9 + $0x70] sm:$0xff] %v241_v14  ;;  %v247_v17 = vld [vmem:[%s2912_s8 + $0x108] sm:$0xff]  ;;  %244 = vst [vmem:[%s2917_s9 + $0x78] sm:$0xff] %v243_v15  ;;  %v249_v18 = vld [vmem:[%s2912_s8 + $0x110] sm:$0xff] }
  0x1d   : > { %246 = vst [vmem:[%s2917_s9 + $0x80] sm:$0xff] %v245_v16  ;;  %248 = vst [vmem:[%s2917_s9 + $0x88] sm:$0xff] %v247_v17  ;;  %v251_v19 = vld [vmem:[%s2912_s8 + $0x118] sm:$0xff]  ;;  %v253_v20 = vld [vmem:[%s2912_s8 + $0x120] sm:$0xff] }
  0x1e   : > { %250 = vst [vmem:[%s2917_s9 + $0x90] sm:$0xff] %v249_v18  ;;  %252 = vst [vmem:[%s2917_s9 + $0x98] sm:$0xff] %v251_v19  ;;  %v255_v21 = vld [vmem:[%s2912_s8 + $0x128] sm:$0xff]  ;;  %v257_v22 = vld [vmem:[%s2912_s8 + $0x130] sm:$0xff] }
  0x1f   : > { %254 = vst [vmem:[%s2917_s9 + $0xa0] sm:$0xff] %v253_v20  ;;  %v259_v23 = vld [vmem:[%s2912_s8 + $0x138] sm:$0xff]  ;;  %256 = vst [vmem:[%s2917_s9 + $0xa8] sm:$0xff] %v255_v21  ;;  %v261_v24 = vld [vmem:[%s2912_s8 + $0x180] sm:$0xff] }
  0x20   : > { %258 = vst [vmem:[%s2917_s9 + $0xb0] sm:$0xff] %v257_v22  ;;  %260 = vst [vmem:[%s2917_s9 + $0xb8] sm:$0xff] %v259_v23  ;;  %v263_v25 = vld [vmem:[%s2912_s8 + $0x188] sm:$0xff]  ;;  %v265_v26 = vld [vmem:[%s2912_s8 + $0x190] sm:$0xff] }
  0x21   : > { %262 = vst [vmem:[%s2917_s9 + $0xc0] sm:$0xff] %v261_v24  ;;  %264 = vst [vmem:[%s2917_s9 + $0xc8] sm:$0xff] %v263_v25  ;;  %v267_v27 = vld [vmem:[%s2912_s8 + $0x198] sm:$0xff]  ;;  %v269_v28 = vld [vmem:[%s2912_s8 + $0x1a0] sm:$0xff] }
  0x22   : > { %266 = vst [vmem:[%s2917_s9 + $0xd0] sm:$0xff] %v265_v26  ;;  %v271_v29 = vld [vmem:[%s2912_s8 + $0x1a8] sm:$0xff]  ;;  %268 = vst [vmem:[%s2917_s9 + $0xd8] sm:$0xff] %v267_v27  ;;  %v273_v30 = vld [vmem:[%s2912_s8 + $0x1b0] sm:$0xff] }
  0x23   : > { %270 = vst [vmem:[%s2917_s9 + $0xe0] sm:$0xff] %v269_v28  ;;  %272 = vst [vmem:[%s2917_s9 + $0xe8] sm:$0xff] %v271_v29  ;;  %v275_v31 = vld [vmem:[%s2912_s8 + $0x1b8] sm:$0xff] }
  0x24   : > { %274 = vst [vmem:[%s2917_s9 + $0xf0] sm:$0xff] %v273_v30  ;;  %276 = vst [vmem:[%s2917_s9 + $0xf8] sm:$0xff] %v275_v31 }
  0x25 PF: > { %282 = sbr.rel (!%p2896_p4) target bundleno = 45 (0x2d), region = 55  ;;  %s284_s10 = sand.u32 (%p2896_p4), 1, %s2828_s19  }
  0x26   : > { %s2623_s11 = sshll.u32 (%p2896_p4), %s2832_s20, 4  ;;  %s2178_s12 = sshll.u32 (%p2896_p4), %s284_s10, 6 }
  0x27   : > { %s289_s15 = scalar_lea.vmem (%p2896_p4), %s4208_s2, %s2623_s11  ;;  %s286_s16 = scalar_lea.vmem (%p2896_p4), [#allocation3], %s2178_s12 }
  0x28   : > { %v302_v32 = vld [vmem:[%s289_s15] sm:$0xff] (%p2896_p4)  ;;  %v304_v33 = vld [vmem:[%s289_s15 + $0x8] sm:$0xff] (%p2896_p4) }
  0x29   : > { %v306_v34 = vld [vmem:[%s289_s15 + $0x20] sm:$0xff] (%p2896_p4)  ;;  %303 = vst [vmem:[%s286_s16] sm:$0xff] (%p2896_p4), %v302_v32  ;;  %305 = vst [vmem:[%s286_s16 + $0x8] sm:$0xff] (%p2896_p4), %v304_v33  ;;  %v308_v35 = vld [vmem:[%s289_s15 + $0x28] sm:$0xff] (%p2896_p4) }
  0x2a   : > { %307 = vst [vmem:[%s286_s16 + $0x10] sm:$0xff] (%p2896_p4), %v306_v34  ;;  %v310_v36 = vld [vmem:[%s289_s15 + $0x40] sm:$0xff] (%p2896_p4)  ;;  %v312_v37 = vld [vmem:[%s289_s15 + $0x48] sm:$0xff] (%p2896_p4)  ;;  %309 = vst [vmem:[%s286_s16 + $0x18] sm:$0xff] (%p2896_p4), %v308_v35 }
  0x2b   : > { %311 = vst [vmem:[%s286_s16 + $0x20] sm:$0xff] (%p2896_p4), %v310_v36  ;;  %313 = vst [vmem:[%s286_s16 + $0x28] sm:$0xff] (%p2896_p4), %v312_v37  ;;  %v314_v38 = vld [vmem:[%s289_s15 + $0x60] sm:$0xff] (%p2896_p4)  ;;  %v316_v39 = vld [vmem:[%s289_s15 + $0x68] sm:$0xff] (%p2896_p4) }
  0x2c   : > { %315 = vst [vmem:[%s286_s16 + $0x30] sm:$0xff] %v314_v38  ;;  %317 = vst [vmem:[%s286_s16 + $0x38] sm:$0xff] %v316_v39 }
  0x2d PF: > { %p2181_p7 = scmp.ge.s32.totalorder %s2832_s20, 1  ;;  %p322_p8 = scmp.lt.s32.totalorder %s2832_s20, 3 }
  0x2f   : > { %p323_p9 = pnand %p2181_p7, %p322_p8 }
  0x30   : > { %s2185_s17 = sshll.u32 (!%p323_p9), %s2881_s21, 1  ;;  %v381_v40 = vlaneseq (!%p323_p9)  ;;  %s329_s23 = sand.u32 (!%p323_p9), 1, %s2824_s18  }
  0x31   : > { %326 = sbr.rel (%p323_p9) target bundleno = 1017 (0x3f9), region = 78  ;;  %p372_p10 = scmp.lt.s32.totalorder (!%p323_p9), %s2185_s17, 3 }
  0x32   : > { %v2991_v41 = vshrl.u32 (!%p323_p9), %v381_v40, 7  ;;  %s2182_s24 = sshll.u32 (!%p323_p9), %s329_s23, 8  ;;  %s2187_s6 = sshll.u32 (!%p323_p9), %s2881_s21, 10 }
  0x33   : > { %s2995_s28 = scalar_lea.vmem (!%p323_p9), [#allocation2], %s2182_s24  ;;  %v513_v50 = vstv (!%p323_p9), %s2187_s6  ;;  %s3677_s7 = sshll.u32 (!%p323_p9), %s329_s23, 6 }
  0x34   : > { %v1179_v42 = vld [vmem:[%s2995_s28 + $0x18] sm:$0xff] (!%p323_p9)  ;;  %v523_v43 = vsub.s32 (!%p323_p9), 1, %v2991_v41  ;;  %v519_v44 = vsub.s32 (!%p323_p9), 0, %v2991_v41  ;;  %v414_v54 = vadd.s32 (!%p323_p9), 256, %v2991_v41  ;;  %v415_v55 = vadd.s32 (!%p323_p9), 264, %v2991_v41  ;;  %v1178_v29 = vld [vmem:[%s2995_s28 + $0x10] sm:$0xff] (!%p323_p9) }
  0x35   : > { %v1187_v45 = vld [vmem:[%s2995_s28 + $0x58] sm:$0xff] (!%p323_p9)  ;;  %v416_v57 = vadd.s32 (!%p323_p9), 272, %v2991_v41  ;;  %v417_v58 = vadd.s32 (!%p323_p9), 280, %v2991_v41  ;;  %v418_v59 = vadd.s32 (!%p323_p9), 288, %v2991_v41  ;;  %v419_v63 = vadd.s32 (!%p323_p9), 296, %v2991_v41  ;;  %v1186_v30 = vld [vmem:[%s2995_s28 + $0x50] sm:$0xff] (!%p323_p9) }
  0x36   : > { %v1211_v48 = vpack.c.bf16 (!%p323_p9), %v1187_v45, %v1179_v42  ;;  %v420_v1 = vadd.s32 (!%p323_p9), 304, %v2991_v41  ;;  %v421_v2 = vadd.s32 (!%p323_p9), 312, %v2991_v41  ;;  %v422_v3 = vadd.s32 (!%p323_p9), 320, %v2991_v41  ;;  %v1195_v35 = vld [vmem:[%s2995_s28 + $0x98] sm:$0xff] (!%p323_p9)  ;;  %s3733_s18 = scalar_lea.vmem (!%p323_p9), [#allocation3], %s3677_s7  ;;  %s4168_s8 = scalar_lea.vmem (!%p323_p9), [#allocation4], %s3677_s7 }
  0x37   : > { %v423_v4 = vadd.s32 (!%p323_p9), 328, %v2991_v41  ;;  %v424_v5 = vadd.s32 (!%p323_p9), 336, %v2991_v41  ;;  %v425_v6 = vadd.s32 (!%p323_p9), 344, %v2991_v41  ;;  %v426_v7 = vadd.s32 (!%p323_p9), 352, %v2991_v41  ;;  %v1203_v36 = vld [vmem:[%s2995_s28 + $0xd8] sm:$0xff] (!%p323_p9) }
  0x38   : > { %s4272_s17 = smov (!%p372_p10, %s2185_s17), 3  ;;  %1309 = vmatprep.mubr.bf16.mxu0 %v1211_v48  ;;  %v427_v8 = vadd.s32 360, %v2991_v41  ;;  %v428_v9 = vadd.s32 368, %v2991_v41  ;;  %v429_v10 = vadd.s32 376, %v2991_v41  ;;  %v430_v11 = vadd.s32 384, %v2991_v41  ;;  %s2624_s7 = sshll.u32 (%p2900_p5), %s2881_s21, 4 }
  0x39   : > { %s2186_s26 = sshll.u32 %s4272_s17, 1  ;;  %v431_v12 = vadd.s32 392, %v2991_v41  ;;  %v432_v13 = vadd.s32 400, %v2991_v41  ;;  %v433_v14 = vadd.s32 408, %v2991_v41  ;;  %v434_v15 = vadd.s32 416, %v2991_v41  ;;  %s2053_s11 = scalar_lea.vmem (%p2900_p5), %s4211_s5, %s2624_s7 }
  0x3a   : > { %s375_s30 = scalar_lea.vmem %s4206_s0, %s2186_s26  ;;  %v435_v16 = vadd.s32 424, %v2991_v41  ;;  %v436_v17 = vadd.s32 432, %v2991_v41  ;;  %v437_v18 = vadd.s32 440, %v2991_v41  ;;  %v438_v19 = vadd.s32 448, %v2991_v41 }
  0x3b   : > { %v510_v46 = vld [vmem:[%s375_s30] ss:$2 sm:$0x3]  ;;  %v2188_v47 = vld [vmem:[%s375_s30 + $0x1] ss:$2 sm:$0x3]  ;;  %v1210_v34 = vpack.c.bf16 %v1186_v30, %v1178_v29 }
  0x3c   : > { %v2689_v49 = vtrunc.f32 %v510_v46  ;;  %v789_v52 = vrot.slane %v2188_v47, %v523_v43  ;;  %v785_v53 = vrot.slane %v2188_v47, %v519_v44  ;;  %v439_v20 = vadd.s32 456, %v2991_v41 }
  0x3d   : > { %v440_v21 = vadd.s32 464, %v2991_v41  ;;  %v441_v22 = vadd.s32 472, %v2991_v41  ;;  %v442_v23 = vadd.s32 480, %v2991_v41  ;;  %v443_v24 = vadd.s32 488, %v2991_v41 }
  0x3e   : > { %v2690_v51 = vcvt.f32.s32 %v2689_v49  ;;  %v3012_v61 = vpack.c.bf16 %v789_v52, %v789_v52  ;;  %v3017_v0 = vpack.c.bf16 %v785_v53, %v785_v53  ;;  %v444_v25 = vadd.s32 496, %v2991_v41  ;;  %v1181_v52 = vld [vmem:[%s2995_s28 + $0x28] sm:$0xff] }
  0x3f   : > { %v445_v26 = vadd.s32 504, %v2991_v41  ;;  %v446_v27 = vadd.s32 512, %v2991_v41  ;;  %v447_v28 = vadd.s32 520, %v2991_v41  ;;  %v383_v31 = vadd.s32 8, %v2991_v41  ;;  %v1189_v53 = vld [vmem:[%s2995_s28 + $0x68] sm:$0xff] }
  0x40   : > { %v514_v56 = vsub.s32 %v2690_v51, %v513_v50  ;;  %v448_v32 = vadd.s32 528, %v2991_v41  ;;  %v449_v33 = vadd.s32 536, %v2991_v41  ;;  %v384_v37 = vadd.s32 16, %v2991_v41  ;;  %v1194_v50 = vld [vmem:[%s2995_s28 + $0x90] sm:$0xff] }
  0x41   : > { %v385_v38 = vadd.s32 24, %v2991_v41  ;;  %v450_v39 = vadd.s32 544, %v2991_v41  ;;  %v451_v40 = vadd.s32 552, %v2991_v41  ;;  %v386_v46 = vadd.s32 32, %v2991_v41  ;;  %v1202_v51 = vld [vmem:[%s2995_s28 + $0xd0] sm:$0xff] }
  0x42   : > { %v3010_v60 = vrot.slane %v514_v56, %v523_v43  ;;  %v3014_v62 = vrot.slane %v514_v56, %v519_v44  ;;  %v1219_v43 = vpack.c.bf16 %v1203_v36, %v1195_v35  ;;  %v452_v44 = vadd.s32 560, %v2991_v41 }
  0x43   : > { %v387_v47 = vadd.s32 40, %v2991_v41  ;;  %v453_v48 = vadd.s32 568, %v2991_v41  ;;  %v389_v56 = vadd.s32 56, %v2991_v41  ;;  %v399_v29 = vadd.s32 136, %v2991_v41 }
  0x44   : > { %vm590_vm0 = vcmp.eq.s32.totalorder %v414_v54, %v3010_v60  ;;  %vm592_vm1 = vcmp.eq.s32.totalorder %v415_v55, %v3010_v60  ;;  %vm589_vm2 = vcmp.eq.s32.totalorder %v414_v54, %v3014_v62  ;;  %vm591_vm3 = vcmp.eq.s32.totalorder %v415_v55, %v3014_v62 }
  0x45   : > { %vm2285_vm4 = vmpackc.low %vm592_vm1, %vm590_vm0  ;;  %vm594_vm5 = vcmp.eq.s32.totalorder %v416_v57, %v3010_v60  ;;  %vm596_vm6 = vcmp.eq.s32.totalorder %v417_v58, %v3010_v60  ;;  %vm593_vm7 = vcmp.eq.s32.totalorder %v416_v57, %v3014_v62  ;;  %vm595_vm8 = vcmp.eq.s32.totalorder %v417_v58, %v3014_v62 }
  0x46   : > { %2287 = vmatprep.subr.msk.bf16.mxu0 %vm2285_vm4, %v3012_v61  ;;  %vm2288_vm9 = vmpackc.low %vm591_vm3, %vm589_vm2  ;;  %vm598_vm10 = vcmp.eq.s32.totalorder %v418_v59, %v3010_v60  ;;  %vm600_vm11 = vcmp.eq.s32.totalorder %v419_v63, %v3010_v60  ;;  %vm597_vm15 = vcmp.eq.s32.totalorder %v418_v59, %v3014_v62  ;;  %vm599_vm0 = vcmp.eq.s32.totalorder %v419_v63, %v3014_v62 }
  0x47   : > { %2290 = vmatpush1.bf16.msk.msra.mxu0 %vm2288_vm9, %v3017_v0  ;;  %vm2291_vm12 = vmpackc.low %vm596_vm6, %vm594_vm5  ;;  %vm602_vm1 = vcmp.eq.s32.totalorder %v420_v1, %v3010_v60  ;;  %vm604_vm2 = vcmp.eq.s32.totalorder %v421_v2, %v3010_v60  ;;  %vm601_vm5 = vcmp.eq.s32.totalorder %v420_v1, %v3014_v62  ;;  %vm603_vm6 = vcmp.eq.s32.totalorder %v421_v2, %v3014_v62 }
  0x48   : > { %2293 = vmatprep.subr.msk.bf16.mxu0 %vm2291_vm12, %v3012_v61  ;;  %vm2294_vm13 = vmpackc.low %vm595_vm8, %vm593_vm7  ;;  %vm606_vm7 = vcmp.eq.s32.totalorder %v422_v3, %v3010_v60  ;;  %vm608_vm8 = vcmp.eq.s32.totalorder %v423_v4, %v3010_v60  ;;  %vm607_vm12 = vcmp.eq.s32.totalorder %v423_v4, %v3014_v62  ;;  %v388_v55 = vadd.s32 48, %v2991_v41 }
  0x49   : > { %vm2297_vm14 = vmpackc.low %vm600_vm11, %vm598_vm10  ;;  %vm605_vm11 = vcmp.eq.s32.totalorder %v422_v3, %v3014_v62  ;;  %v454_v57 = vadd.s32 576, %v2991_v41  ;;  %v455_v58 = vadd.s32 584, %v2991_v41  ;;  %v1218_v59 = vpack.c.bf16 %v1202_v51, %v1194_v50 }
  0x4a   : > { %vm2300_vm3 = vmpackc.low %vm599_vm0, %vm597_vm15  ;;  %v1213_v1 = vpack.c.bf16 %v1189_v53, %v1181_v52  ;;  %v390_v3 = vadd.s32 64, %v2991_v41  ;;  %v391_v4 = vadd.s32 72, %v2991_v41  ;;  %v464_v30 = vadd.s32 656, %v2991_v41 }
  0x4b   : > { %2296 = vmatpush1.bf16.msk.msra.mxu0 %vm2294_vm13, %v3017_v0  ;;  %vm2303_vm4 = vmpackc.low %vm604_vm2, %vm602_vm1  ;;  %vm610_vm13 = vcmp.eq.s32.totalorder %v424_v5, %v3010_v60  ;;  %vm609_vm1 = vcmp.eq.s32.totalorder %v424_v5, %v3014_v62  ;;  %vm611_vm2 = vcmp.eq.s32.totalorder %v425_v6, %v3014_v62  ;;  %v456_v5 = vadd.s32 592, %v2991_v41 }
  0x4c   : > { %2299 = vmatprep.subr.msk.bf16.mxu0 %vm2297_vm14, %v3012_v61  ;;  %vm2306_vm9 = vmpackc.low %vm603_vm6, %vm601_vm5  ;;  %vm612_vm14 = vcmp.eq.s32.totalorder %v425_v6, %v3010_v60  ;;  %v457_v6 = vadd.s32 600, %v2991_v41  ;;  %v466_v35 = vadd.s32 672, %v2991_v41  ;;  %v467_v36 = vadd.s32 680, %v2991_v41 }
  0x4d   : > { %vm2309_vm10 = vmpackc.low %vm608_vm8, %vm606_vm7  ;;  %vm613_vm7 = vcmp.eq.s32.totalorder %v426_v7, %v3014_v62  ;;  %vm615_vm8 = vcmp.eq.s32.totalorder %v427_v8, %v3014_v62  ;;  %v469_v42 = vadd.s32 696, %v2991_v41  ;;  %v405_v45 = vadd.s32 184, %v2991_v41 }
  0x4e   : > { %vm2312_vm15 = vmpackc.low %vm607_vm12, %vm605_vm11  ;;  %v406_v49 = vadd.s32 192, %v2991_v41  ;;  %v407_v50 = vadd.s32 200, %v2991_v41  ;;  %v472_v51 = vadd.s32 720, %v2991_v41  ;;  %v473_v52 = vadd.s32 728, %v2991_v41 }
  0x4f   : > { %2302 = vmatpush1.bf16.msk.msra.mxu0 %vm2300_vm3, %v3017_v0  ;;  %vm2315_vm0 = vmpackc.low %vm612_vm14, %vm610_vm13  ;;  %vm614_vm3 = vcmp.eq.s32.totalorder %v426_v7, %v3010_v60  ;;  %vm617_vm13 = vcmp.eq.s32.totalorder %v428_v9, %v3014_v62  ;;  %vm619_vm14 = vcmp.eq.s32.totalorder %v429_v10, %v3014_v62  ;;  %v408_v54 = vadd.s32 208, %v2991_v41 }
  0x50   : > { %2305 = vmatprep.subr.msk.bf16.mxu0 %vm2303_vm4, %v3012_v61  ;;  %vm616_vm4 = vcmp.eq.s32.totalorder %v427_v8, %v3010_v60  ;;  %vm2318_vm5 = vmpackc.low %vm611_vm2, %vm609_vm1  ;;  %v392_v8 = vadd.s32 80, %v2991_v41  ;;  %v411_v63 = vadd.s32 232, %v2991_v41  ;;  %v477_v2 = vadd.s32 760, %v2991_v41 }
  0x51   : > { %vm2321_vm6 = vmpackc.low %vm616_vm4, %vm614_vm3  ;;  %vm621_vm3 = vcmp.eq.s32.totalorder %v430_v11, %v3014_v62  ;;  %vm623_vm4 = vcmp.eq.s32.totalorder %v431_v12, %v3014_v62  ;;  %v479_v7 = vadd.s32 776, %v2991_v41 }
  0x52   : > { %vm2324_vm11 = vmpackc.low %vm615_vm8, %vm613_vm7 }
  0x53   : > { %2308 = vmatpush1.bf16.msk.msra.mxu0 %vm2306_vm9, %v3017_v0  ;;  %vm618_vm9 = vcmp.eq.s32.totalorder %v428_v9, %v3010_v60  ;;  %vm2330_vm1 = vmpackc.low %vm619_vm14, %vm617_vm13  ;;  %v393_v9 = vadd.s32 88, %v2991_v41 }
  0x54   : > { %2311 = vmatprep.subr.msk.bf16.mxu0 %vm2309_vm10, %v3012_v61  ;;  %vm620_vm10 = vcmp.eq.s32.totalorder %v429_v10, %v3010_v60  ;;  %vm2336_vm7 = vmpackc.low %vm623_vm4, %vm621_vm3  ;;  %v458_v10 = vadd.s32 608, %v2991_v41 }
  0x55   : > { %vm2327_vm12 = vmpackc.low %vm620_vm10, %vm618_vm9  ;;  %vm625_vm9 = vcmp.eq.s32.totalorder %v432_v13, %v3014_v62  ;;  %vm627_vm10 = vcmp.eq.s32.totalorder %v433_v14, %v3014_v62 }
  0x56   : > { %vm2342_vm13 = vmpackc.low %vm627_vm10, %vm625_vm9 }
  0x57   : > { %2314 = vmatpush1.bf16.msk.msra.mxu0 %vm2312_vm15, %v3017_v0  ;;  %vm622_vm15 = vcmp.eq.s32.totalorder %v430_v11, %v3010_v60  ;;  %v459_v11 = vadd.s32 616, %v2991_v41 }
  0x58   : > { %2317 = vmatprep.subr.msk.bf16.mxu0 %vm2315_vm0, %v3012_v61  ;;  %vm624_vm0 = vcmp.eq.s32.totalorder %v431_v12, %v3010_v60  ;;  %v480_v12 = vadd.s32 784, %v2991_v41 }
  0x59   : > { %vm2333_vm2 = vmpackc.low %vm624_vm0, %vm622_vm15  ;;  %vm629_vm15 = vcmp.eq.s32.totalorder %v434_v15, %v3014_v62  ;;  %vm631_vm0 = vcmp.eq.s32.totalorder %v435_v16, %v3014_v62 }
  0x5a   : > { %vm2348_vm3 = vmpackc.low %vm631_vm0, %vm629_vm15 }
  0x5b   : > { %2320 = vmatpush1.bf16.msk.msra.mxu0 %vm2318_vm5, %v3017_v0  ;;  %vm626_vm5 = vcmp.eq.s32.totalorder %v432_v13, %v3010_v60  ;;  %v394_v13 = vadd.s32 96, %v2991_v41 }
  0x5c   : > { %2323 = vmatprep.subr.msk.bf16.mxu0 %vm2321_vm6, %v3012_v61  ;;  %vm628_vm6 = vcmp.eq.s32.totalorder %v433_v14, %v3010_v60  ;;  %v3736_v14 = vld [vmem:[%s3733_s18 + $0x8] sm:$0xff] }
  0x5d   : > { %vm2339_vm8 = vmpackc.low %vm628_vm6, %vm626_vm5  ;;  %vm633_vm5 = vcmp.eq.s32.totalorder %v436_v17, %v3014_v62  ;;  %vm635_vm6 = vcmp.eq.s32.totalorder %v437_v18, %v3014_v62 }
  0x5e   : > { %vm2354_vm9 = vmpackc.low %vm635_vm6, %vm633_vm5 }
  0x5f   : > { %2326 = vmatpush1.bf16.msk.msra.mxu0 %vm2324_vm11, %v3017_v0  ;;  %vm630_vm11 = vcmp.eq.s32.totalorder %v434_v15, %v3010_v60  ;;  %v395_v15 = vadd.s32 104, %v2991_v41 }
  0x60   : > { %2329 = vmatprep.subr.msk.bf16.mxu0 %vm2327_vm12, %v3012_v61  ;;  %vm632_vm12 = vcmp.eq.s32.totalorder %v435_v16, %v3010_v60  ;;  %v460_v16 = vadd.s32 624, %v2991_v41 }
  0x61   : > { %vm2345_vm14 = vmpackc.low %vm632_vm12, %vm630_vm11  ;;  %vm637_vm11 = vcmp.eq.s32.totalorder %v438_v19, %v3014_v62  ;;  %vm639_vm12 = vcmp.eq.s32.totalorder %v439_v20, %v3014_v62 }
  0x62   : > { %vm2360_vm15 = vmpackc.low %vm639_vm12, %vm637_vm11 }
  0x63   : > { %2332 = vmatpush1.bf16.msk.msra.mxu0 %vm2330_vm1, %v3017_v0  ;;  %vm634_vm1 = vcmp.eq.s32.totalorder %v436_v17, %v3010_v60  ;;  %v461_v17 = vadd.s32 632, %v2991_v41 }
  0x64   : > { %2335 = vmatprep.subr.msk.bf16.mxu0 %vm2333_vm2, %v3012_v61  ;;  %vm636_vm2 = vcmp.eq.s32.totalorder %v437_v18, %v3010_v60  ;;  %v1177_v18 = vld [vmem:[%s2995_s28 + $0x8] sm:$0xff] }
  0x65   : > { %vm2351_vm4 = vmpackc.low %vm636_vm2, %vm634_vm1  ;;  %vm641_vm1 = vcmp.eq.s32.totalorder %v440_v21, %v3014_v62  ;;  %vm643_vm2 = vcmp.eq.s32.totalorder %v441_v22, %v3014_v62 }
  0x66   : > { %vm2366_vm5 = vmpackc.low %vm643_vm2, %vm641_vm1  ;;  %vm653_vm2 = vcmp.eq.s32.totalorder %v446_v27, %v3014_v62 }
  0x67   : > { %2338 = vmatpush1.bf16.msk.msra.mxu0 %vm2336_vm7, %v3017_v0  ;;  %vm638_vm7 = vcmp.eq.s32.totalorder %v438_v19, %v3010_v60  ;;  %v1185_v19 = vld [vmem:[%s2995_s28 + $0x48] sm:$0xff] }
  0x68   : > { %2341 = vmatprep.subr.msk.bf16.mxu0 %vm2339_vm8, %v3012_v61  ;;  %vm640_vm8 = vcmp.eq.s32.totalorder %v439_v20, %v3010_v60  ;;  %v1184_v20 = vld [vmem:[%s2995_s28 + $0x40] sm:$0xff] }
  0x69   : > { %vm2357_vm10 = vmpackc.low %vm640_vm8, %vm638_vm7  ;;  %vm645_vm7 = vcmp.eq.s32.totalorder %v442_v23, %v3014_v62  ;;  %vm647_vm8 = vcmp.eq.s32.totalorder %v443_v24, %v3014_v62 }
  0x6a   : > { %vm2372_vm11 = vmpackc.low %vm647_vm8, %vm645_vm7  ;;  %vm658_vm7 = vcmp.eq.s32.totalorder %v448_v32, %v3010_v60  ;;  %vm660_vm8 = vcmp.eq.s32.totalorder %v449_v33, %v3010_v60 }
  0x6b   : > { %2344 = vmatpush1.bf16.msk.msra.mxu0 %vm2342_vm13, %v3017_v0  ;;  %vm642_vm13 = vcmp.eq.s32.totalorder %v440_v21, %v3010_v60  ;;  %v396_v21 = vadd.s32 112, %v2991_v41 }
  0x6c   : > { %2347 = vmatprep.subr.msk.bf16.mxu0 %vm2345_vm14, %v3012_v61  ;;  %vm644_vm14 = vcmp.eq.s32.totalorder %v441_v22, %v3010_v60  ;;  %v397_v22 = vadd.s32 120, %v2991_v41 }
  0x6d   : > { %vm2363_vm0 = vmpackc.low %vm644_vm14, %vm642_vm13  ;;  %vm649_vm13 = vcmp.eq.s32.totalorder %v444_v25, %v3014_v62  ;;  %vm651_vm14 = vcmp.eq.s32.totalorder %v445_v26, %v3014_v62 }
  0x6e   : > { %vm2378_vm1 = vmpackc.low %vm651_vm14, %vm649_vm13  ;;  %vm659_vm13 = vcmp.eq.s32.totalorder %v449_v33, %v3014_v62  ;;  %v400_v33 = vadd.s32 144, %v2991_v41 }
  0x6f   : > { %2350 = vmatpush1.bf16.msk.msra.mxu0 %vm2348_vm3, %v3017_v0  ;;  %vm646_vm3 = vcmp.eq.s32.totalorder %v442_v23, %v3010_v60  ;;  %v1209_v23 = vpack.c.bf16 %v1185_v19, %v1177_v18  ;;  %v1205_v18 = vld [vmem:[%s2995_s28 + $0xe8] sm:$0xff]  ;;  %v1176_v19 = vld [vmem:[%s2995_s28] sm:$0xff] }
  0x70   : > { %2353 = vmatprep.subr.msk.bf16.mxu0 %vm2351_vm4, %v3012_v61  ;;  %vm648_vm4 = vcmp.eq.s32.totalorder %v443_v24, %v3010_v60  ;;  %v462_v24 = vadd.s32 640, %v2991_v41 }
  0x71   : > { %vm2369_vm6 = vmpackc.low %vm648_vm4, %vm646_vm3  ;;  %vm655_vm3 = vcmp.eq.s32.totalorder %v447_v28, %v3014_v62  ;;  %1256 = vmatprep.mubr.bf16.mxu1 %v1209_v23  ;;  %v1193_v23 = vld [vmem:[%s2995_s28 + $0x88] sm:$0xff] }
  0x73   : > { %2356 = vmatpush1.bf16.msk.msra.mxu0 %vm2354_vm9, %v3017_v0  ;;  %vm650_vm9 = vcmp.eq.s32.totalorder %v444_v25, %v3010_v60  ;;  %v463_v25 = vadd.s32 648, %v2991_v41 }
  0x74   : > { %2359 = vmatprep.subr.msk.bf16.mxu0 %vm2357_vm10, %v3012_v61  ;;  %vm652_vm10 = vcmp.eq.s32.totalorder %v445_v26, %v3010_v60 }
  0x75   : > { %vm2375_vm12 = vmpackc.low %vm652_vm10, %vm650_vm9  ;;  %vm525_vm10 = vcmp.eq.s32.totalorder %v2991_v41, %v3014_v62 }
  0x76   : > { %vm3163_vm9 = vmpackc.low %vm655_vm3, %vm653_vm2  ;;  %vm662_vm2 = vcmp.eq.s32.totalorder %v450_v39, %v3010_v60  ;;  %vm664_vm3 = vcmp.eq.s32.totalorder %v451_v40, %v3010_v60 }
  0x77   : > { %2362 = vmatpush1.bf16.msk.msra.mxu0 %vm2360_vm15, %v3017_v0  ;;  %vm654_vm15 = vcmp.eq.s32.totalorder %v446_v27, %v3010_v60  ;;  %v483_v27 = vadd.s32 808, %v2991_v41 }
  0x78   : > { %2365 = vmatprep.subr.msk.bf16.mxu0 %vm2363_vm0, %v3012_v61  ;;  %vm656_vm0 = vcmp.eq.s32.totalorder %v447_v28, %v3010_v60  ;;  %v398_v28 = vadd.s32 128, %v2991_v41 }
  0x79   : > { %vm2381_vm4 = vmpackc.low %vm656_vm0, %vm654_vm15  ;;  %vm530_vm0 = vcmp.eq.s32.totalorder %v384_v37, %v3010_v60 }
  0x7a   : > { %vm3179_vm15 = vmpackc.low %vm660_vm8, %vm658_vm7  ;;  %vm531_vm7 = vcmp.eq.s32.totalorder %v385_v38, %v3014_v62  ;;  %vm661_vm8 = vcmp.eq.s32.totalorder %v450_v39, %v3014_v62  ;;  %v403_v39 = vadd.s32 168, %v2991_v41 }
  0x7b   : > { %2368 = vmatpush1.bf16.msk.msra.mxu0 %vm2366_vm5, %v3017_v0  ;;  %vm526_vm5 = vcmp.eq.s32.totalorder %v2991_v41, %v3010_v60 }
  0x7c   : > { %2371 = vmatprep.subr.msk.bf16.mxu0 %vm2369_vm6, %v3012_v61  ;;  %vm528_vm6 = vcmp.eq.s32.totalorder %v383_v31, %v3010_v60 }
  0x7d   : > { %vm2189_vm14 = vmpackc.low %vm528_vm6, %vm526_vm5  ;;  %vm529_vm6 = vcmp.eq.s32.totalorder %v384_v37, %v3014_v62 }
  0x7e   : > { %2191 = vmatprep.subr.msk.bf16.mxu1 %vm2189_vm14, %v3012_v61  ;;  %vm536_vm14 = vcmp.eq.s32.totalorder %v387_v47, %v3010_v60 }
  0x7f   : > { %2374 = vmatpush1.bf16.msk.msra.mxu0 %vm2372_vm11, %v3017_v0  ;;  %vm527_vm11 = vcmp.eq.s32.totalorder %v383_v31, %v3014_v62  ;;  %v465_v31 = vadd.s32 664, %v2991_v41 }
  0x80   : > { %2377 = vmatprep.subr.msk.bf16.mxu0 %vm2375_vm12, %v3012_v61  ;;  %vm657_vm12 = vcmp.eq.s32.totalorder %v448_v32, %v3014_v62  ;;  %v3802_v32 = vld [vmem:[%s3733_s18 + $0x38] sm:$0xff] }
  0x81   : > { %vm3203_vm5 = vmpackc.low %vm659_vm13, %vm657_vm12  ;;  %vm534_vm13 = vcmp.eq.s32.totalorder %v386_v46, %v3010_v60 }
  0x82   : > { %vm3228_vm12 = vmpackc.low %vm664_vm3, %vm662_vm2  ;;  %vm533_vm2 = vcmp.eq.s32.totalorder %v386_v46, %v3014_v62  ;;  %vm535_vm3 = vcmp.eq.s32.totalorder %v387_v47, %v3014_v62  ;;  %v470_v46 = vadd.s32 704, %v2991_v41  ;;  %v471_v47 = vadd.s32 712, %v2991_v41 }
  0x83   : > { %2380 = vmatpush1.bf16.msk.msra.mxu0 %vm2378_vm1, %v3017_v0  ;;  %vm532_vm1 = vcmp.eq.s32.totalorder %v385_v38, %v3010_v60  ;;  %v402_v38 = vadd.s32 160, %v2991_v41 }
  0x84   : > { %2383 = vmatprep.subr.msk.bf16.mxu0 %vm2381_vm4, %v3012_v61  ;;  %vm2192_vm4 = vmpackc.low %vm527_vm11, %vm525_vm10  ;;  %vm666_vm10 = vcmp.eq.s32.totalorder %v452_v44, %v3010_v60 }
  0x85   : > { %2194 = vmatpush1.bf16.msk.msra.mxu1 %vm2192_vm4, %v3017_v0  ;;  %vm2195_vm11 = vmpackc.low %vm532_vm1, %vm530_vm0  ;;  %vm665_vm4 = vcmp.eq.s32.totalorder %v452_v44, %v3014_v62  ;;  %v404_v44 = vadd.s32 176, %v2991_v41 }
  0x86   : > { %1310 = vmatmul.mubr.bf16.vlgmr.msra.gmra.mrb[0].mxu0 %v1210_v34  ;;  %2197 = vmatprep.subr.msk.bf16.mxu1 %vm2195_vm11, %v3012_v61  ;;  %vm2198_vm0 = vmpackc.low %vm531_vm7, %vm529_vm6  ;;  %vm670_vm11 = vcmp.eq.s32.totalorder %v454_v57, %v3010_v60  ;;  %v401_v34 = vadd.s32 152, %v2991_v41 }
  0x87   : > { %2386 = vmatpush1.bf16.msk.msra.mxu0 %vm3163_vm9, %v3017_v0  ;;  %1319 = vmatprep.mubr.bf16.mxu0 %v1219_v43  ;;  %vm663_vm9 = vcmp.eq.s32.totalorder %v451_v40, %v3014_v62  ;;  %vm2201_vm6 = vmpackc.low %vm536_vm14, %vm534_vm13  ;;  %vm537_vm14 = vcmp.eq.s32.totalorder %v388_v55, %v3014_v62  ;;  %v468_v40 = vadd.s32 688, %v2991_v41  ;;  %v3836_v43 = vld [vmem:[%s3733_s18 + $0x30] sm:$0xff] }
  0x88   : > { %2389 = vmatprep.subr.msk.bf16.mxu0 %vm3179_vm15, %v3012_v61  ;;  %vm668_vm15 = vcmp.eq.s32.totalorder %v453_v48, %v3010_v60  ;;  %vm3251_vm1 = vmpackc.low %vm663_vm9, %vm661_vm8  ;;  %vm538_vm8 = vcmp.eq.s32.totalorder %v388_v55, %v3010_v60  ;;  %vm540_vm9 = vcmp.eq.s32.totalorder %v389_v56, %v3010_v60  ;;  %v409_v55 = vadd.s32 216, %v2991_v41 }
  0x89   : > { %2200 = vmatpush1.bf16.msk.msra.mxu1 %vm2198_vm0, %v3017_v0  ;;  %vm3271_vm7 = vmpackc.low %vm668_vm15, %vm666_vm10  ;;  %vm539_vm15 = vcmp.eq.s32.totalorder %v389_v56, %v3014_v62  ;;  %vm669_vm0 = vcmp.eq.s32.totalorder %v454_v57, %v3014_v62  ;;  %v474_v56 = vadd.s32 736, %v2991_v41  ;;  %v475_v57 = vadd.s32 744, %v2991_v41 }
  0x8a   : > { %2203 = vmatprep.subr.msk.bf16.mxu1 %vm2201_vm6, %v3012_v61  ;;  %vm2204_vm10 = vmpackc.low %vm535_vm3, %vm533_vm2  ;;  %vm674_vm6 = vcmp.eq.s32.totalorder %v456_v5, %v3010_v60 }
  0x8b   : > { %2392 = vmatpush1.bf16.msk.msra.mxu0 %vm3203_vm5, %v3017_v0  ;;  %vm667_vm5 = vcmp.eq.s32.totalorder %v453_v48, %v3014_v62  ;;  %vm2207_vm2 = vmpackc.low %vm540_vm9, %vm538_vm8  ;;  %v1191_v48 = vld [vmem:[%s2995_s28 + $0x78] sm:$0xff] }
  0x8c   : > { %2395 = vmatprep.subr.msk.bf16.mxu0 %vm3228_vm12, %v3012_v61  ;;  %vm672_vm12 = vcmp.eq.s32.totalorder %v455_v58, %v3010_v60  ;;  %vm3295_vm13 = vmpackc.low %vm667_vm5, %vm665_vm4  ;;  %vm542_vm4 = vcmp.eq.s32.totalorder %v390_v3, %v3010_v60  ;;  %vm544_vm5 = vcmp.eq.s32.totalorder %v391_v4, %v3010_v60 }
  0x8d   : > { %2206 = vmatpush1.bf16.msk.msra.mxu1 %vm2204_vm10, %v3017_v0  ;;  %vm2405_vm3 = vmpackc.low %vm672_vm12, %vm670_vm11  ;;  %vm541_vm11 = vcmp.eq.s32.totalorder %v390_v3, %v3014_v62  ;;  %vm543_vm12 = vcmp.eq.s32.totalorder %v391_v4, %v3014_v62  ;;  %vm673_vm10 = vcmp.eq.s32.totalorder %v456_v5, %v3014_v62  ;;  %v412_v4 = vadd.s32 240, %v2991_v41  ;;  %v2716_v3 = vld [vmem:[%s4209_s3 + $0x30] sm:$0xff]  }
  0x8e   : > { %1320 = vmatmul.mubr.bf16.gmra.mrb[4].mxu0 %v1218_v59  ;;  %2209 = vmatprep.subr.msk.bf16.mxu1 %vm2207_vm2, %v3012_v61  ;;  %vm2210_vm8 = vmpackc.low %vm539_vm15, %vm537_vm14  ;;  %vm678_vm2 = vcmp.eq.s32.totalorder %v458_v10, %v3010_v60  ;;  %v410_v59 = vadd.s32 224, %v2991_v41  ;;  %v413_v5 = vadd.s32 248, %v2991_v41 }
  0x8f   : > { %2398 = vmatpush1.bf16.msk.msra.mxu0 %vm3251_vm1, %v3017_v0  ;;  %1362 = vmatprep.mubr.bf16.mxu0 %v1213_v1  ;;  %vm671_vm1 = vcmp.eq.s32.totalorder %v455_v58, %v3014_v62  ;;  %vm2213_vm14 = vmpackc.low %vm544_vm5, %vm542_vm4  ;;  %v476_v1 = vadd.s32 752, %v2991_v41  ;;  %v488_v58 = vadd.s32 848, %v2991_v41 }
  0x90   : > { %2401 = vmatprep.subr.msk.bf16.mxu0 %vm3271_vm7, %v3012_v61  ;;  %vm676_vm7 = vcmp.eq.s32.totalorder %v457_v6, %v3010_v60  ;;  %vm3335_vm9 = vmpackc.low %vm671_vm1, %vm669_vm0  ;;  %vm546_vm0 = vcmp.eq.s32.totalorder %v392_v8, %v3010_v60  ;;  %vm548_vm1 = vcmp.eq.s32.totalorder %v393_v9, %v3010_v60 }
  0x91   : > { %2212 = vmatpush1.bf16.msk.msra.mxu1 %vm2210_vm8, %v3017_v0  ;;  %vm3352_vm15 = vmpackc.low %vm676_vm7, %vm674_vm6  ;;  %vm545_vm6 = vcmp.eq.s32.totalorder %v392_v8, %v3014_v62  ;;  %vm547_vm7 = vcmp.eq.s32.totalorder %v393_v9, %v3014_v62  ;;  %vm677_vm8 = vcmp.eq.s32.totalorder %v458_v10, %v3014_v62  ;;  %v1180_v10 = vld [vmem:[%s2995_s28 + $0x20] sm:$0xff]  ;;  %v2717_v8 = vld [vmem:[%s4209_s3 + $0x38] sm:$0xff]   ;;  %v496_v9 = vadd.s32 912, %v2991_v41 }
  0x92   : > { %2215 = vmatprep.subr.msk.bf16.mxu1 %vm2213_vm14, %v3012_v61  ;;  %vm2216_vm4 = vmpackc.low %vm543_vm12, %vm541_vm11  ;;  %vm550_vm12 = vcmp.eq.s32.totalorder %v394_v13, %v3010_v60  ;;  %vm682_vm14 = vcmp.eq.s32.totalorder %v460_v16, %v3010_v60 }
  0x93   : > { %2404 = vmatpush1.bf16.msk.msra.mxu0 %vm3295_vm13, %v3017_v0  ;;  %vm675_vm13 = vcmp.eq.s32.totalorder %v457_v6, %v3014_v62  ;;  %vm2219_vm11 = vmpackc.low %vm548_vm1, %vm546_vm0  ;;  %v478_v6 = vadd.s32 768, %v2991_v41 }
  0x94   : > { %2407 = vmatprep.subr.msk.bf16.mxu0 %vm2405_vm3, %v3012_v61  ;;  %vm680_vm3 = vcmp.eq.s32.totalorder %v459_v11, %v3010_v60  ;;  %vm3377_vm5 = vmpackc.low %vm675_vm13, %vm673_vm10  ;;  %vm552_vm13 = vcmp.eq.s32.totalorder %v395_v15, %v3010_v60 }
  0x95   : > { %2218 = vmatpush1.bf16.msk.msra.mxu1 %vm2216_vm4, %v3017_v0  ;;  %vm2417_vm10 = vmpackc.low %vm680_vm3, %vm678_vm2  ;;  %vm549_vm2 = vcmp.eq.s32.totalorder %v394_v13, %v3014_v62  ;;  %vm551_vm3 = vcmp.eq.s32.totalorder %v395_v15, %v3014_v62  ;;  %vm681_vm4 = vcmp.eq.s32.totalorder %v460_v16, %v3014_v62  ;;  %v481_v13 = vadd.s32 792, %v2991_v41  ;;  %v3739_v15 = vld [vmem:[%s3733_s18 + $0x18] sm:$0xff] }
  0x96   : > { %2221 = vmatprep.subr.msk.bf16.mxu1 %vm2219_vm11, %v3012_v61  ;;  %vm2222_vm0 = vmpackc.low %vm547_vm7, %vm545_vm6  ;;  %vm683_vm6 = vcmp.eq.s32.totalorder %v461_v17, %v3014_v62  ;;  %vm686_vm11 = vcmp.eq.s32.totalorder %v462_v24, %v3010_v60  ;;  %v500_v16 = vadd.s32 944, %v2991_v41 }
  0x97   : > { %2410 = vmatpush1.bf16.msk.msra.mxu0 %vm3335_vm9, %v3017_v0  ;;  %vm679_vm9 = vcmp.eq.s32.totalorder %v459_v11, %v3014_v62  ;;  %v1188_v11 = vld [vmem:[%s2995_s28 + $0x60] sm:$0xff] }
  0x98   : > { %2413 = vmatprep.subr.msk.bf16.mxu0 %vm3352_vm15, %v3012_v61  ;;  %vm684_vm15 = vcmp.eq.s32.totalorder %v461_v17, %v3010_v60  ;;  %vm3417_vm1 = vmpackc.low %vm679_vm9, %vm677_vm8  ;;  %vm554_vm8 = vcmp.eq.s32.totalorder %v396_v21, %v3010_v60  ;;  %vm556_vm9 = vcmp.eq.s32.totalorder %v397_v22, %v3010_v60  ;;  %v1197_v17 = vld [vmem:[%s2995_s28 + $0xa8] sm:$0xff]  ;;  %v1212_v26 = vpack.c.bf16 %v1188_v11, %v1180_v10 }
  0x99   : > { %2224 = vmatpush1.bf16.msk.msra.mxu1 %vm2222_vm0, %v3017_v0  ;;  %vm3431_vm7 = vmpackc.low %vm684_vm15, %vm682_vm14  ;;  %vm553_vm14 = vcmp.eq.s32.totalorder %v396_v21, %v3014_v62  ;;  %vm555_vm15 = vcmp.eq.s32.totalorder %v397_v22, %v3014_v62  ;;  %vm685_vm0 = vcmp.eq.s32.totalorder %v462_v24, %v3014_v62  ;;  %v482_v22 = vadd.s32 800, %v2991_v41  ;;  %v1201_v24 = vld [vmem:[%s2995_s28 + $0xc8] sm:$0xff] }
  0x9a   : > { %v497_v10 = vadd.s32 920, %v2991_v41  ;;  %v498_v11 = vadd.s32 928, %v2991_v41  ;;  %v504_v21 = vadd.s32 976, %v2991_v41 }
  0x9b   : > { %2416 = vmatpush1.bf16.msk.msra.mxu0 %vm3377_vm5, %v3017_v0  ;;  %vm2225_vm5 = vmpackc.low %vm552_vm13, %vm550_vm12 }
  0x9c   : > { %2419 = vmatprep.subr.msk.bf16.mxu0 %vm2417_vm10, %v3012_v61  ;;  %2227 = vmatprep.subr.msk.bf16.mxu1 %vm2225_vm5, %v3012_v61  ;;  %vm688_vm10 = vcmp.eq.s32.totalorder %v463_v25, %v3010_v60  ;;  %vm2228_vm12 = vmpackc.low %vm551_vm3, %vm549_vm2  ;;  %vm690_vm5 = vcmp.eq.s32.totalorder %v464_v30, %v3010_v60 }
  0x9d   : > { %vm3455_vm13 = vmpackc.low %vm683_vm6, %vm681_vm4  ;;  %2230 = vmatpush1.bf16.msk.msra.mxu1 %vm2228_vm12, %v3017_v0  ;;  %vm558_vm4 = vcmp.eq.s32.totalorder %v398_v28, %v3010_v60  ;;  %vm560_vm6 = vcmp.eq.s32.totalorder %v399_v29, %v3010_v60  ;;  %vm689_vm12 = vcmp.eq.s32.totalorder %v464_v30, %v3014_v62  ;;  %v1221_v30 = vpack.c.bf16 %v1205_v18, %v1197_v17 }
  0x9e   : > { %vm2231_vm2 = vmpackc.low %vm556_vm9, %vm554_vm8  ;;  %v501_v17 = vadd.s32 952, %v2991_v41  ;;  %v502_v18 = vadd.s32 960, %v2991_v41 }
  0x9f   : > { %2422 = vmatpush1.bf16.msk.msra.mxu0 %vm3417_vm1, %v3017_v0  ;;  %vm687_vm1 = vcmp.eq.s32.totalorder %v463_v25, %v3014_v62  ;;  %vm2429_vm3 = vmpackc.low %vm688_vm10, %vm686_vm11  ;;  %2233 = vmatprep.subr.msk.bf16.mxu1 %vm2231_vm2, %v3012_v61  ;;  %vm557_vm11 = vcmp.eq.s32.totalorder %v398_v28, %v3014_v62  ;;  %vm559_vm10 = vcmp.eq.s32.totalorder %v399_v29, %v3014_v62  ;;  %v3790_v28 = vld [vmem:[%s3733_s18] sm:$0xff]  ;;  %v3793_v29 = vld [vmem:[%s3733_s18 + $0x10] sm:$0xff] }
  0xa0   : > { %2425 = vmatprep.subr.msk.bf16.mxu0 %vm3431_vm7, %v3012_v61  ;;  %vm692_vm7 = vcmp.eq.s32.totalorder %v465_v31, %v3010_v60  ;;  %vm2234_vm8 = vmpackc.low %vm555_vm15, %vm553_vm14  ;;  %vm691_vm14 = vcmp.eq.s32.totalorder %v465_v31, %v3014_v62  ;;  %vm694_vm2 = vcmp.eq.s32.totalorder %v466_v35, %v3010_v60  ;;  %v1473_v25 = vpack.c.bf16 %v3739_v15, %v3736_v14  ;;  %v3799_v31 = vld [vmem:[%s3733_s18 + $0x28] sm:$0xff] }
  0xa1   : > { %vm3491_vm9 = vmpackc.low %vm687_vm1, %vm685_vm0  ;;  %2236 = vmatpush1.bf16.msk.msra.mxu1 %vm2234_vm8, %v3017_v0  ;;  %vm562_vm0 = vcmp.eq.s32.totalorder %v400_v33, %v3010_v60  ;;  %vm564_vm1 = vcmp.eq.s32.totalorder %v401_v34, %v3010_v60  ;;  %vm693_vm8 = vcmp.eq.s32.totalorder %v466_v35, %v3014_v62  ;;  %v1472_v37 = vpack.c.bf16 %v3793_v29, %v3790_v28  ;;  %v1198_v35 = vld [vmem:[%s2995_s28 + $0xb0] sm:$0xff] }
  0xa2   : > { %vm2435_vm15 = vmpackc.low %vm692_vm7, %vm690_vm5  ;;  %vm561_vm5 = vcmp.eq.s32.totalorder %v400_v33, %v3014_v62  ;;  %vm563_vm7 = vcmp.eq.s32.totalorder %v401_v34, %v3014_v62  ;;  %v1208_v34 = vpack.c.bf16 %v1184_v20, %v1176_v19  ;;  %v503_v19 = vadd.s32 968, %v2991_v41  ;;  %v2719_v20 = vld [vmem:[%s4209_s3 + $0x48] sm:$0xff]  }
  0xa3   : > { %2428 = vmatpush1.bf16.msk.msra.mxu0 %vm3455_vm13, %v3017_v0  ;;  %vm2237_vm13 = vmpackc.low %vm560_vm6, %vm558_vm4 }
  0xa4   : > { %2431 = vmatprep.subr.msk.bf16.mxu0 %vm2429_vm3, %v3012_v61  ;;  %2239 = vmatprep.subr.msk.bf16.mxu1 %vm2237_vm13, %v3012_v61  ;;  %vm696_vm3 = vcmp.eq.s32.totalorder %v467_v36, %v3010_v60  ;;  %vm2240_vm4 = vmpackc.low %vm559_vm10, %vm557_vm11  ;;  %vm695_vm11 = vcmp.eq.s32.totalorder %v467_v36, %v3014_v62  ;;  %vm698_vm13 = vcmp.eq.s32.totalorder %v468_v40, %v3010_v60 }
  0xa5   : > { %vm3525_vm6 = vmpackc.low %vm691_vm14, %vm689_vm12  ;;  %2242 = vmatpush1.bf16.msk.msra.mxu1 %vm2240_vm4, %v3017_v0  ;;  %vm566_vm12 = vcmp.eq.s32.totalorder %v402_v38, %v3010_v60  ;;  %vm568_vm14 = vcmp.eq.s32.totalorder %v403_v39, %v3010_v60  ;;  %vm697_vm4 = vcmp.eq.s32.totalorder %v468_v40, %v3014_v62  ;;  %v1217_v36 = vpack.c.bf16 %v1201_v24, %v1193_v23 }
  0xa6   : > { %vm2441_vm10 = vmpackc.low %vm696_vm3, %vm694_vm2  ;;  %vm565_vm2 = vcmp.eq.s32.totalorder %v402_v38, %v3014_v62  ;;  %vm567_vm3 = vcmp.eq.s32.totalorder %v403_v39, %v3014_v62  ;;  %v484_v38 = vadd.s32 816, %v2991_v41  ;;  %v485_v39 = vadd.s32 824, %v2991_v41 }
  0xa7   : > { %2434 = vmatpush1.bf16.msk.msra.mxu0 %vm3491_vm9, %v3017_v0  ;;  %vm2243_vm9 = vmpackc.low %vm564_vm1, %vm562_vm0  ;;  %v1475_v40 = vpack.c.bf16 %v3802_v32, %v3799_v31  ;;  %v506_v23 = vadd.s32 992, %v2991_v41  ;;  %v507_v24 = vadd.s32 1000, %v2991_v41 }
  0xa8   : > { %2437 = vmatprep.subr.msk.bf16.mxu0 %vm2435_vm15, %v3012_v61  ;;  %2245 = vmatprep.subr.msk.bf16.mxu1 %vm2243_vm9, %v3012_v61  ;;  %vm700_vm15 = vcmp.eq.s32.totalorder %v469_v42, %v3010_v60  ;;  %vm2246_vm0 = vmpackc.low %vm563_vm7, %vm561_vm5  ;;  %vm699_vm5 = vcmp.eq.s32.totalorder %v469_v42, %v3014_v62  ;;  %vm702_vm9 = vcmp.eq.s32.totalorder %v470_v46, %v3010_v60  ;;  %v3833_v42 = vld [vmem:[%s3733_s18 + $0x20] sm:$0xff] }
  0xa9   : > { %vm3559_vm1 = vmpackc.low %vm695_vm11, %vm693_vm8  ;;  %2248 = vmatpush1.bf16.msk.msra.mxu1 %vm2246_vm0, %v3017_v0  ;;  %vm570_vm8 = vcmp.eq.s32.totalorder %v404_v44, %v3010_v60  ;;  %vm572_vm11 = vcmp.eq.s32.totalorder %v405_v45, %v3010_v60  ;;  %vm701_vm0 = vcmp.eq.s32.totalorder %v470_v46, %v3014_v62  ;;  %v1474_v53 = vpack.c.bf16 %v3836_v43, %v3833_v42 }
  0xaa   : > { %vm2447_vm7 = vmpackc.low %vm700_vm15, %vm698_vm13  ;;  %vm569_vm13 = vcmp.eq.s32.totalorder %v404_v44, %v3014_v62  ;;  %vm571_vm15 = vcmp.eq.s32.totalorder %v405_v45, %v3014_v62  ;;  %v1196_v44 = vld [vmem:[%s2995_s28 + $0xa0] sm:$0xff] }
  0xab   : > { %2440 = vmatpush1.bf16.msk.msra.mxu0 %vm3525_vm6, %v3017_v0  ;;  %vm2249_vm6 = vmpackc.low %vm568_vm14, %vm566_vm12  ;;  %v1204_v45 = vld [vmem:[%s2995_s28 + $0xe0] sm:$0xff] }
  0xac   : > { %2443 = vmatprep.subr.msk.bf16.mxu0 %vm2441_vm10, %v3012_v61  ;;  %2251 = vmatprep.subr.msk.bf16.mxu1 %vm2249_vm6, %v3012_v61  ;;  %vm704_vm10 = vcmp.eq.s32.totalorder %v471_v47, %v3010_v60  ;;  %vm2252_vm12 = vmpackc.low %vm567_vm3, %vm565_vm2  ;;  %vm703_vm2 = vcmp.eq.s32.totalorder %v471_v47, %v3014_v62  ;;  %vm706_vm6 = vcmp.eq.s32.totalorder %v472_v51, %v3010_v60  ;;  %v1183_v47 = vld [vmem:[%s2995_s28 + $0x38] sm:$0xff] }
  0xad   : > { %vm3593_vm14 = vmpackc.low %vm699_vm5, %vm697_vm4  ;;  %2254 = vmatpush1.bf16.msk.msra.mxu1 %vm2252_vm12, %v3017_v0  ;;  %vm574_vm4 = vcmp.eq.s32.totalorder %v406_v49, %v3010_v60  ;;  %vm576_vm5 = vcmp.eq.s32.totalorder %v407_v50, %v3010_v60  ;;  %vm705_vm12 = vcmp.eq.s32.totalorder %v472_v51, %v3014_v62  ;;  %v1192_v51 = vld [vmem:[%s2995_s28 + $0x80] sm:$0xff] }
  0xae   : > { %vm2453_vm3 = vmpackc.low %vm704_vm10, %vm702_vm9  ;;  %vm573_vm9 = vcmp.eq.s32.totalorder %v406_v49, %v3014_v62  ;;  %vm575_vm10 = vcmp.eq.s32.totalorder %v407_v50, %v3014_v62  ;;  %v486_v50 = vadd.s32 832, %v2991_v41 }
  0xaf   : > { %2446 = vmatpush1.bf16.msk.msra.mxu0 %vm3559_vm1, %v3017_v0  ;;  %vm2255_vm1 = vmpackc.low %vm572_vm11, %vm570_vm8 }
  0xb0   : > { %2449 = vmatprep.subr.msk.bf16.mxu0 %vm2447_vm7, %v3012_v61  ;;  %2257 = vmatprep.subr.msk.bf16.mxu1 %vm2255_vm1, %v3012_v61  ;;  %vm708_vm7 = vcmp.eq.s32.totalorder %v473_v52, %v3010_v60  ;;  %vm2258_vm8 = vmpackc.low %vm571_vm15, %vm569_vm13  ;;  %vm707_vm13 = vcmp.eq.s32.totalorder %v473_v52, %v3014_v62  ;;  %vm710_vm1 = vcmp.eq.s32.totalorder %v474_v56, %v3010_v60  ;;  %v1200_v52 = vld [vmem:[%s2995_s28 + $0xc0] sm:$0xff] }
  0xb1   : > { %vm3627_vm11 = vmpackc.low %vm703_vm2, %vm701_vm0  ;;  %2260 = vmatpush1.bf16.msk.msra.mxu1 %vm2258_vm8, %v3017_v0  ;;  %vm578_vm0 = vcmp.eq.s32.totalorder %v408_v54, %v3010_v60  ;;  %vm580_vm2 = vcmp.eq.s32.totalorder %v409_v55, %v3010_v60  ;;  %vm709_vm8 = vcmp.eq.s32.totalorder %v474_v56, %v3014_v62  ;;  %v1215_v56 = vpack.c.bf16 %v1191_v48, %v1183_v47 }
  0xb2   : > { %vm2459_vm15 = vmpackc.low %vm708_vm7, %vm706_vm6  ;;  %vm577_vm6 = vcmp.eq.s32.totalorder %v408_v54, %v3014_v62  ;;  %vm579_vm7 = vcmp.eq.s32.totalorder %v409_v55, %v3014_v62  ;;  %v487_v54 = vadd.s32 840, %v2991_v41  ;;  %v1220_v55 = vpack.c.bf16 %v1204_v45, %v1196_v44 }
  0xb3   : > { %2452 = vmatpush1.bf16.msk.msra.mxu0 %vm3593_vm14, %v3017_v0  ;;  %vm2261_vm14 = vmpackc.low %vm576_vm5, %vm574_vm4 }
  0xb4   : > { %2455 = vmatprep.subr.msk.bf16.mxu0 %vm2453_vm3, %v3012_v61  ;;  %2263 = vmatprep.subr.msk.bf16.mxu1 %vm2261_vm14, %v3012_v61  ;;  %vm712_vm3 = vcmp.eq.s32.totalorder %v475_v57, %v3010_v60  ;;  %vm2264_vm4 = vmpackc.low %vm575_vm10, %vm573_vm9  ;;  %vm711_vm9 = vcmp.eq.s32.totalorder %v475_v57, %v3014_v62  ;;  %vm714_vm14 = vcmp.eq.s32.totalorder %v476_v1, %v3010_v60 }
  0xb5   : > { %vm3661_vm5 = vmpackc.low %vm707_vm13, %vm705_vm12  ;;  %2266 = vmatpush1.bf16.msk.msra.mxu1 %vm2264_vm4, %v3017_v0  ;;  %vm582_vm12 = vcmp.eq.s32.totalorder %v410_v59, %v3010_v60  ;;  %vm584_vm13 = vcmp.eq.s32.totalorder %v411_v63, %v3010_v60  ;;  %vm713_vm4 = vcmp.eq.s32.totalorder %v476_v1, %v3014_v62  ;;  %v1216_v57 = vpack.c.bf16 %v1200_v52, %v1192_v51 }
  0xb6   : > { %vm2465_vm10 = vmpackc.low %vm712_vm3, %vm710_vm1  ;;  %vm581_vm1 = vcmp.eq.s32.totalorder %v410_v59, %v3014_v62  ;;  %vm583_vm3 = vcmp.eq.s32.totalorder %v411_v63, %v3014_v62  ;;  %v489_v59 = vadd.s32 856, %v2991_v41  ;;  %v2834_v63 = vmov 0  }
  0xb7   : > { %2458 = vmatpush1.bf16.msk.msra.mxu0 %vm3627_vm11, %v3017_v0  ;;  %vm2267_vm11 = vmpackc.low %vm580_vm2, %vm578_vm0  ;;  %v490_v1 = vadd.s32 864, %v2991_v41 }
  0xb8   : > { %2461 = vmatprep.subr.msk.bf16.mxu0 %vm2459_vm15, %v3012_v61  ;;  %2269 = vmatprep.subr.msk.bf16.mxu1 %vm2267_vm11, %v3012_v61  ;;  %vm716_vm15 = vcmp.eq.s32.totalorder %v477_v2, %v3010_v60  ;;  %vm2270_vm0 = vmpackc.low %vm579_vm7, %vm577_vm6  ;;  %vm715_vm6 = vcmp.eq.s32.totalorder %v477_v2, %v3014_v62  ;;  %vm718_vm11 = vcmp.eq.s32.totalorder %v478_v6, %v3010_v60  ;;  %v491_v2 = vadd.s32 872, %v2991_v41 }
  0xb9   : > { %vm3701_vm2 = vmpackc.low %vm711_vm9, %vm709_vm8  ;;  %2272 = vmatpush1.bf16.msk.msra.mxu1 %vm2270_vm0, %v3017_v0  ;;  %vm586_vm8 = vcmp.eq.s32.totalorder %v412_v4, %v3010_v60  ;;  %vm588_vm9 = vcmp.eq.s32.totalorder %v413_v5, %v3010_v60 }
  0xba   : > { %vm3715_vm7 = vmpackc.low %vm716_vm15, %vm714_vm14  ;;  %vm585_vm14 = vcmp.eq.s32.totalorder %v412_v4, %v3014_v62  ;;  %vm587_vm15 = vcmp.eq.s32.totalorder %v413_v5, %v3014_v62  ;;  %v492_v4 = vadd.s32 880, %v2991_v41  ;;  %v493_v5 = vadd.s32 888, %v2991_v41 }
  0xbb   : > { %2464 = vmatpush1.bf16.msk.msra.mxu0 %vm3661_vm5, %v3017_v0  ;;  %vm2273_vm5 = vmpackc.low %vm584_vm13, %vm582_vm12 }
  0xbc   : > { %2467 = vmatprep.subr.msk.bf16.mxu0 %vm2465_vm10, %v3012_v61  ;;  %2275 = vmatprep.subr.msk.bf16.mxu1 %vm2273_vm5, %v3012_v61  ;;  %vm720_vm10 = vcmp.eq.s32.totalorder %v479_v7, %v3010_v60  ;;  %vm2276_vm12 = vmpackc.low %vm583_vm3, %vm581_vm1  ;;  %vm717_vm1 = vcmp.eq.s32.totalorder %v478_v6, %v3014_v62  ;;  %vm719_vm3 = vcmp.eq.s32.totalorder %v479_v7, %v3014_v62  ;;  %v494_v6 = vadd.s32 896, %v2991_v41 }
  0xbd   : > { %vm3748_vm13 = vmpackc.low %vm715_vm6, %vm713_vm4  ;;  %2278 = vmatpush1.bf16.msk.msra.mxu1 %vm2276_vm12, %v3017_v0  ;;  %vm722_vm4 = vcmp.eq.s32.totalorder %v480_v12, %v3010_v60  ;;  %vm724_vm6 = vcmp.eq.s32.totalorder %v481_v13, %v3010_v60  ;;  %vm728_vm12 = vcmp.eq.s32.totalorder %v483_v27, %v3010_v60  ;;  %v495_v7 = vadd.s32 904, %v2991_v41 }
  0xbe   : > { %vm2279_vm0 = vmpackc.low %vm588_vm9, %vm586_vm8  ;;  %vm721_vm8 = vcmp.eq.s32.totalorder %v480_v12, %v3014_v62  ;;  %v499_v12 = vadd.s32 936, %v2991_v41 }
  0xbf   : > { %2470 = vmatpush1.bf16.msk.msra.mxu0 %vm3701_vm2, %v3017_v0  ;;  %vm3770_vm2 = vmpackc.low %vm720_vm10, %vm718_vm11  ;;  %2281 = vmatprep.subr.msk.bf16.mxu1 %vm2279_vm0, %v3012_v61  ;;  %vm723_vm11 = vcmp.eq.s32.totalorder %v481_v13, %v3014_v62  ;;  %vm726_vm10 = vcmp.eq.s32.totalorder %v482_v22, %v3010_v60  ;;  %vm727_vm0 = vcmp.eq.s32.totalorder %v483_v27, %v3014_v62  ;;  %v2718_v13 = vld [vmem:[%s4209_s3 + $0x40] sm:$0xff]   ;;  %v1190_v27 = vld [vmem:[%s2995_s28 + $0x70] sm:$0xff] }
  0xc0   : > { %2473 = vmatprep.subr.msk.bf16.mxu0 %vm3715_vm7, %v3012_v61  ;;  %vm2282_vm5 = vmpackc.low %vm587_vm15, %vm585_vm14  ;;  %vm725_vm15 = vcmp.eq.s32.totalorder %v482_v22, %v3014_v62  ;;  %v505_v22 = vadd.s32 984, %v2991_v41 }
  0xc1   : > { %vm3811_vm7 = vmpackc.low %vm719_vm3, %vm717_vm1  ;;  %2284 = vmatpush1.bf16.msk.msra.mxu1 %vm2282_vm5, %v3017_v0  ;;  %vm732_vm1 = vcmp.eq.s32.totalorder %v485_v39, %v3010_v60  ;;  %vm731_vm5 = vcmp.eq.s32.totalorder %v485_v39, %v3014_v62 }
  0xc2   : > { %vm3819_vm9 = vmpackc.low %vm724_vm6, %vm722_vm4  ;;  %1525 = vmatprep.subr.bf16.mxu1 %v1473_v25  ;;  %vm729_vm6 = vcmp.eq.s32.totalorder %v484_v38, %v3014_v62  ;;  %v508_v25 = vadd.s32 1008, %v2991_v41 }
  0xc3   : > { %2476 = vmatpush1.bf16.msk.msra.mxu0 %vm3748_vm13, %v3017_v0  ;;  %vm3850_vm13 = vmpackc.low %vm723_vm11, %vm721_vm8  ;;  %vm736_vm8 = vcmp.eq.s32.totalorder %v487_v54, %v3010_v60 }
  0xc4   : > { %2479 = vmatprep.subr.msk.bf16.mxu0 %vm3770_vm2, %v3012_v61  ;;  %1257 = vmatmul.mubr.bf16.vlgmr.msra.gmra.mrb[0].mxu1 %v1208_v34  ;;  %vm3860_vm14 = vmpackc.low %vm728_vm12, %vm726_vm10  ;;  %vm730_vm2 = vcmp.eq.s32.totalorder %v484_v38, %v3010_v60  ;;  %vm733_vm10 = vcmp.eq.s32.totalorder %v486_v50, %v3014_v62  ;;  %vm735_vm12 = vcmp.eq.s32.totalorder %v487_v54, %v3014_v62 }
  0xc5   : > { %1266 = vmatprep.mubr.bf16.mxu1 %v1217_v36  ;;  %1526 = vmatpush1.bf16.msra.mxu1 %v1472_v37  ;;  %vm2492_vm3 = vmpackc.low %vm727_vm0, %vm725_vm15  ;;  %v1206_v36 = vld [vmem:[%s2995_s28 + $0xf0] sm:$0xff] }
  0xc6   : > { %1363 = vmatmul.mubr.bf16.vlgmr.msra.gmra.mrb[0].mxu0 %v1212_v26  ;;  %1527 = vmatprep.subr.bf16.mxu1 %v1475_v40  ;;  %vm2495_vm4 = vmpackc.low %vm732_vm1, %vm730_vm2  ;;  %vm737_vm2 = vcmp.eq.s32.totalorder %v488_v58, %v3014_v62  ;;  %vm739_vm1 = vcmp.eq.s32.totalorder %v489_v59, %v3014_v62  ;;  %v509_v26 = vadd.s32 1016, %v2991_v41  ;;  %v1182_v41 = vld [vmem:[%s2995_s28 + $0x30] sm:$0xff]  ;;  %v1222_v37 = vpack.c.bf16 %v1206_v36, %v1198_v35 }
  0xc7   : > { %2482 = vmatpush1.bf16.msk.msra.mxu0 %vm3811_vm7, %v3017_v0  ;;  %1372 = vmatprep.mubr.bf16.mxu0 %v1221_v30  ;;  %vm734_vm7 = vcmp.eq.s32.totalorder %v486_v50, %v3010_v60  ;;  %vm2504_vm15 = vmpackc.low %vm735_vm12, %vm733_vm10  ;;  %vm748_vm10 = vcmp.eq.s32.totalorder %v493_v5, %v3010_v60  ;;  %v1207_v30 = vld [vmem:[%s2995_s28 + $0xf8] sm:$0xff]  ;;  %v1214_v33 = vpack.c.bf16 %v1190_v27, %v1182_v41  ;;  %v1769_v27 = vld [vmem:[%s4210_s4 + $0x50] sm:$0xff] }
  0xc8   : > { %2485 = vmatprep.subr.msk.bf16.mxu0 %vm3819_vm9, %v3012_v61  ;;  %vm2498_vm9 = vmpackc.low %vm731_vm5, %vm729_vm6  ;;  %vm744_vm6 = vcmp.eq.s32.totalorder %v491_v2, %v3010_v60 }
  0xc9   : > { %1528 = vmatpush1.bf16.msra.mxu1 %v1474_v53  ;;  %vm2501_vm11 = vmpackc.low %vm736_vm8, %vm734_vm7  ;;  %vm741_vm8 = vcmp.eq.s32.totalorder %v490_v1, %v3014_v62 }
  0xca   : > { %vm2510_vm5 = vmpackc.low %vm739_vm1, %vm737_vm2  ;;  %vm752_vm2 = vcmp.eq.s32.totalorder %v495_v7, %v3010_v60 }
  0xcb   : > { %2488 = vmatpush1.bf16.msk.msra.mxu0 %vm3850_vm13, %v3017_v0  ;;  %vm738_vm13 = vcmp.eq.s32.totalorder %v488_v58, %v3010_v60 }
  0xcc   : > { %2491 = vmatprep.subr.msk.bf16.mxu0 %vm3860_vm14, %v3012_v61  ;;  %1267 = vmatmul.mubr.bf16.gmra.mrb[4].mxu1 %v1216_v57  ;;  %vm740_vm14 = vcmp.eq.s32.totalorder %v489_v59, %v3010_v60 }
  0xcd   : > { %1557 = vmatprep.mubr.bf16.mxu1 %v2834_v63  ;;  %vm2507_vm0 = vmpackc.low %vm740_vm14, %vm738_vm13  ;;  %vm745_vm14 = vcmp.eq.s32.totalorder %v492_v4, %v3014_v62 }
  0xce   : > { %1373 = vmatmul.mubr.bf16.gmra.mrb[4].mxu0 %v1220_v55 }
  0xcf   : > { %2494 = vmatpush1.bf16.msk.msra.mxu0 %vm2492_vm3, %v3017_v0  ;;  %1415 = vmatprep.mubr.bf16.mxu0 %v1215_v56  ;;  %vm1506_vm3 = vcmask 261120  }
  0xd0   : > { %2497 = vmatprep.subr.msk.bf16.mxu0 %vm2495_vm4, %v3012_v61  ;;  %vm742_vm4 = vcmp.eq.s32.totalorder %v490_v1, %v3010_v60 }
  0xd1   : > { %vm2513_vm7 = vmpackc.low %vm744_vm6, %vm742_vm4  ;;  %vm749_vm6 = vcmp.eq.s32.totalorder %v494_v6, %v3014_v62 }
  0xd3   : > { %2500 = vmatpush1.bf16.msk.msra.mxu0 %vm2498_vm9, %v3017_v0  ;;  %vm743_vm9 = vcmp.eq.s32.totalorder %v491_v2, %v3014_v62 }
  0xd4   : > { %2503 = vmatprep.subr.msk.bf16.mxu0 %vm2501_vm11, %v3012_v61  ;;  %2579 = vmatmul.mubr.msk.bf16.vlgmr.msra.gmra.mrb[8].mxu1 %vm1506_vm3, %v2716_v3  ;;  %vm746_vm11 = vcmp.eq.s32.totalorder %v492_v4, %v3010_v60  ;;  %vm2516_vm12 = vmpackc.low %vm743_vm9, %vm741_vm8  ;;  %vm756_vm8 = vcmp.eq.s32.totalorder %v497_v10, %v3010_v60 }
  0xd5   : > { %1567 = vmatprep.mubr.bf16.mxu1 %v2834_v63  ;;  %vm2519_vm13 = vmpackc.low %vm748_vm10, %vm746_vm11  ;;  %vm753_vm10 = vcmp.eq.s32.totalorder %v496_v9, %v3014_v62 }
  0xd7   : > { %2506 = vmatpush1.bf16.msk.msra.mxu0 %vm2504_vm15, %v3017_v0  ;;  %vm747_vm15 = vcmp.eq.s32.totalorder %v493_v5, %v3014_v62 }
  0xd8   : > { %2509 = vmatprep.subr.msk.bf16.mxu0 %vm2507_vm0, %v3012_v61  ;;  %vm750_vm0 = vcmp.eq.s32.totalorder %v494_v6, %v3010_v60  ;;  %vm2522_vm1 = vmpackc.low %vm747_vm15, %vm745_vm14  ;;  %vm760_vm14 = vcmp.eq.s32.totalorder %v499_v12, %v3010_v60 }
  0xd9   : > { %vm2525_vm4 = vmpackc.low %vm752_vm2, %vm750_vm0  ;;  %vm757_vm2 = vcmp.eq.s32.totalorder %v498_v11, %v3014_v62 }
  0xdb   : > { %2512 = vmatpush1.bf16.msk.msra.mxu0 %vm2510_vm5, %v3017_v0  ;;  %vm751_vm5 = vcmp.eq.s32.totalorder %v495_v7, %v3014_v62 }
  0xdc   : > { %2515 = vmatprep.subr.msk.bf16.mxu0 %vm2513_vm7, %v3012_v61  ;;  %2580 = vmatmul.mubr.msk.bf16.gmra.mrb[12].mxu1 %vm1506_vm3, %v2717_v8  ;;  %vm754_vm7 = vcmp.eq.s32.totalorder %v496_v9, %v3010_v60  ;;  %vm2528_vm9 = vmpackc.low %vm751_vm5, %vm749_vm6  ;;  %vm764_vm6 = vcmp.eq.s32.totalorder %v501_v17, %v3010_v60  ;;  %v2722_v9 = vld [vmem:[%s4209_s3] sm:$0xff]  }
  0xdd   : > { %1577 = vmatprep.mubr.bf16.mxu1 %v2834_v63  ;;  %vm2531_vm11 = vmpackc.low %vm756_vm8, %vm754_vm7  ;;  %vm761_vm8 = vcmp.eq.s32.totalorder %v500_v16, %v3014_v62 }
  0xdf   : > { %2518 = vmatpush1.bf16.msk.msra.mxu0 %vm2516_vm12, %v3017_v0  ;;  %vm755_vm12 = vcmp.eq.s32.totalorder %v497_v10, %v3014_v62  ;;  %v2723_v10 = vld [vmem:[%s4209_s3 + $0x8] sm:$0xff]  }
  0xe0   : > { %2521 = vmatprep.subr.msk.bf16.mxu0 %vm2519_vm13, %v3012_v61  ;;  %vm758_vm13 = vcmp.eq.s32.totalorder %v498_v11, %v3010_v60  ;;  %vm2534_vm15 = vmpackc.low %vm755_vm12, %vm753_vm10  ;;  %vm768_vm10 = vcmp.eq.s32.totalorder %v503_v19, %v3010_v60  ;;  %v2724_v11 = vld [vmem:[%s4209_s3 + $0x10] sm:$0xff]  }
  0xe1   : > { %vm2537_vm0 = vmpackc.low %vm760_vm14, %vm758_vm13  ;;  %vm765_vm14 = vcmp.eq.s32.totalorder %v502_v18, %v3014_v62 }
  0xe3   : > { %2524 = vmatpush1.bf16.msk.msra.mxu0 %vm2522_vm1, %v3017_v0  ;;  %vm759_vm1 = vcmp.eq.s32.totalorder %v499_v12, %v3014_v62  ;;  %v2725_v12 = vld [vmem:[%s4209_s3 + $0x18] sm:$0xff]  }
  0xe4   : > { %2527 = vmatprep.subr.msk.bf16.mxu0 %vm2525_vm4, %v3012_v61  ;;  %2581 = vmatmul.mubr.msk.bf16.gmra.mrb[16].mxu1 %vm1506_vm3, %v2718_v13  ;;  %vm762_vm4 = vcmp.eq.s32.totalorder %v500_v16, %v3010_v60  ;;  %vm2540_vm5 = vmpackc.low %vm759_vm1, %vm757_vm2  ;;  %vm772_vm2 = vcmp.eq.s32.totalorder %v505_v22, %v3010_v60  ;;  %v2726_v13 = vld [vmem:[%s4209_s3 + $0x20] sm:$0xff]   ;;  %v2727_v16 = vld [vmem:[%s4209_s3 + $0x28] sm:$0xff]  }
  0xe5   : > { %1587 = vmatprep.mubr.bf16.mxu1 %v2834_v63  ;;  %vm2543_vm7 = vmpackc.low %vm764_vm6, %vm762_vm4  ;;  %vm769_vm6 = vcmp.eq.s32.totalorder %v504_v21, %v3014_v62 }
  0xe7   : > { %2530 = vmatpush1.bf16.msk.msra.mxu0 %vm2528_vm9, %v3017_v0  ;;  %vm763_vm9 = vcmp.eq.s32.totalorder %v501_v17, %v3014_v62 }
  0xe8   : > { %2533 = vmatprep.subr.msk.bf16.mxu0 %vm2531_vm11, %v3012_v61  ;;  %vm766_vm11 = vcmp.eq.s32.totalorder %v502_v18, %v3010_v60  ;;  %vm2546_vm12 = vmpackc.low %vm763_vm9, %vm761_vm8  ;;  %vm776_vm8 = vcmp.eq.s32.totalorder %v507_v24, %v3010_v60 }
  0xe9   : > { %vm2549_vm13 = vmpackc.low %vm768_vm10, %vm766_vm11  ;;  %vm773_vm10 = vcmp.eq.s32.totalorder %v506_v23, %v3014_v62 }
  0xeb   : > { %2536 = vmatpush1.bf16.msk.msra.mxu0 %vm2534_vm15, %v3017_v0  ;;  %vm767_vm15 = vcmp.eq.s32.totalorder %v503_v19, %v3014_v62 }
  0xec   : > { %2539 = vmatprep.subr.msk.bf16.mxu0 %vm2537_vm0, %v3012_v61  ;;  %2582 = vmatmul.mubr.msk.bf16.gmra.mrb[20].mxu1 %vm1506_vm3, %v2719_v20  ;;  %vm770_vm0 = vcmp.eq.s32.totalorder %v504_v21, %v3010_v60  ;;  %vm2552_vm1 = vmpackc.low %vm767_vm15, %vm765_vm14  ;;  %vm780_vm14 = vcmp.eq.s32.totalorder %v509_v26, %v3010_v60 }
  0xed   : > { %1597 = vmatprep.mubr.bf16.mxu1 %v2834_v63  ;;  %vm2555_vm4 = vmpackc.low %vm772_vm2, %vm770_vm0  ;;  %vm777_vm2 = vcmp.eq.s32.totalorder %v508_v25, %v3014_v62 }
  0xef   : > { %2542 = vmatpush1.bf16.msk.msra.mxu0 %vm2540_vm5, %v3017_v0  ;;  %vm771_vm5 = vcmp.eq.s32.totalorder %v505_v22, %v3014_v62 }
  0xf0   : > { %2545 = vmatprep.subr.msk.bf16.mxu0 %vm2543_vm7, %v3012_v61  ;;  %vm774_vm7 = vcmp.eq.s32.totalorder %v506_v23, %v3010_v60  ;;  %vm2558_vm9 = vmpackc.low %vm771_vm5, %vm769_vm6 }
  0xf1   : > { %vm2561_vm11 = vmpackc.low %vm776_vm8, %vm774_vm7 }
  0xf3   : > { %2548 = vmatpush1.bf16.msk.msra.mxu0 %vm2546_vm12, %v3017_v0  ;;  %vm775_vm12 = vcmp.eq.s32.totalorder %v507_v24, %v3014_v62 }
  0xf4   : > { %2551 = vmatprep.subr.msk.bf16.mxu0 %vm2549_vm13, %v3012_v61  ;;  %vm778_vm13 = vcmp.eq.s32.totalorder %v508_v25, %v3010_v60  ;;  %vm2564_vm15 = vmpackc.low %vm775_vm12, %vm773_vm10  ;;  %v1199_v60 = vld [vmem:[%s2995_s28 + $0xb8] sm:$0xff]  ;;  %v1767_v25 = vld [vmem:[%s4210_s4 + $0x40] sm:$0xff] }
  0xf5   : > { %vm2567_vm0 = vmpackc.low %vm780_vm14, %vm778_vm13  ;;  %v1223_v34 = vpack.c.bf16 %v1207_v30, %v1199_v60 }
  0xf7   : > { %2554 = vmatpush1.bf16.msk.msra.mxu0 %vm2552_vm1, %v3017_v0  ;;  %vm779_vm1 = vcmp.eq.s32.totalorder %v509_v26, %v3014_v62  ;;  %v2720_v62 = vld [vmem:[%s4209_s3 + $0x50] sm:$0xff]   ;;  %v1768_v26 = vld [vmem:[%s4210_s4 + $0x48] sm:$0xff] }
  0xf8   : > { %2557 = vmatprep.subr.msk.bf16.mxu0 %vm2555_vm4, %v3012_v61  ;;  %vm2570_vm4 = vmpackc.low %vm779_vm1, %vm777_vm2  ;;  %2583 = vmatmul.mubr.msk.bf16.gmra.mrb[24].mxu1 %vm1506_vm3, %v2720_v62 }
  0xf9   : > { %1607 = vmatprep.mubr.bf16.mxu1 %v2834_v63 }
  0xfb   : > { %2560 = vmatpush1.bf16.msk.msra.mxu0 %vm2558_vm9, %v3017_v0 }
  0xfc   : > { %2563 = vmatprep.subr.msk.bf16.mxu0 %vm2561_vm11, %v3012_v61 }
  0xff   : > { %2566 = vmatpush1.bf16.msk.msra.mxu0 %vm2564_vm15, %v3017_v0 }
 0x100   : > { %2569 = vmatprep.subr.msk.bf16.mxu0 %vm2567_vm0, %v3012_v61  ;;  %v2721_v61 = vld [vmem:[%s4209_s3 + $0x58] sm:$0xff]  }
 0x101   : > { %2584 = vmatmul.mubr.msk.bf16.gmra.mrb[28].mxu1 %vm1506_vm3, %v2721_v61 }
 0x102   : > { %1698 = vmatprep.mubr.bf16.mxu1 %v2834_v63 }
 0x103   : > { %2572 = vmatpush1.bf16.msk.msra.mxu0 %vm2570_vm4, %v3017_v0 }
 0x106   : > { %1416 = vmatmul.mubr.bf16.vlgmr.msra.gmra.mrb[0].mxu0 %v1214_v33  ;;  %v1770_v33 = vld [vmem:[%s4210_s4 + $0x58] sm:$0xff] }
 0x107   : > { %1425 = vmatprep.mubr.bf16.mxu0 %v1223_v34 }
 0x10e   : > { %1426 = vmatmul.mubr.bf16.gmra.mrb[4].mxu0 %v1222_v37 }
 0x197   : > { %v1258_v0 = vpop.f32.mrb[0].mxu1 }
 0x198   : > { %v1260_v38 = vpop.f32.mrb[1].mxu1 }
 0x199   : > { %v1262_v39 = vpop.f32.mrb[2].mxu1 }
 0x19a   : > { %v1264_v40 = vpop.f32.mrb[3].mxu1 }
 0x19f   : > { %v1268_v44 = vpop.f32.mrb[4].mxu1 }
 0x1a0   : > { %v1270_v45 = vpop.f32.mrb[5].mxu1 }
 0x1a1   : > { %v1272_v46 = vpop.f32.mrb[6].mxu1 }
 0x1a2   : > { %v1274_v47 = vpop.f32.mrb[7].mxu1 }
 0x1d9   : > { %v1417_v48 = vpop.f32.mrb[0].mxu0 }
 0x1da   : > { %v2625_v49 = vadd.f32 %v1417_v48, %v1258_v0  ;;  %v1419_v50 = vpop.f32.mrb[1].mxu0 }
 0x1db   : > { %v2626_v51 = vadd.f32 %v1419_v50, %v1260_v38  ;;  %v1421_v52 = vpop.f32.mrb[2].mxu0 }
 0x1dc   : > { %v2627_v53 = vadd.f32 %v1421_v52, %v1262_v39  ;;  %v1423_v54 = vpop.f32.mrb[3].mxu0 }
 0x1dd   : > { %v2628_v55 = vadd.f32 %v1423_v54, %v1264_v40  ;;  %v1771_v40 = vld [vmem:[%s4210_s4 + $0x60] sm:$0xff] }
 0x1de   : > { %v1456_v56 = vpack.c.bf16 %v2627_v53, %v2625_v49  ;;  %v1774_v49 = vld [vmem:[%s4210_s4 + $0x78] sm:$0xff] }
 0x1df   : > { %v1457_v57 = vpack.c.bf16 %v2628_v55, %v2626_v51 }
 0x1e1   : > { %v1427_v58 = vpop.f32.mrb[4].mxu0  ;;  %1666 = vmatprep.subr.bf16.mxu1 %v1457_v57 }
 0x1e2   : > { %v2629_v59 = vadd.f32 %v1427_v58, %v1268_v44  ;;  %v1429_v1 = vpop.f32.mrb[5].mxu0  ;;  %1667 = vmatpush1.bf16.msra.mxu1 %v1456_v56  ;;  %v1772_v44 = vld [vmem:[%s4210_s4 + $0x68] sm:$0xff] }
 0x1e3   : > { %v2630_v2 = vadd.f32 %v1429_v1, %v1270_v45  ;;  %v1431_v3 = vpop.f32.mrb[6].mxu0 }
 0x1e4   : > { %v2631_v4 = vadd.f32 %v1431_v3, %v1272_v46  ;;  %v1433_v5 = vpop.f32.mrb[7].mxu0  ;;  %v1773_v46 = vld [vmem:[%s4210_s4 + $0x70] sm:$0xff] }
 0x1e5   : > { %v2632_v6 = vadd.f32 %v1433_v5, %v1274_v47 }
 0x1e6   : > { %v1458_v7 = vpack.c.bf16 %v2631_v4, %v2629_v59 }
 0x1e7   : > { %v1459_v8 = vpack.c.bf16 %v2632_v6, %v2630_v2 }
 0x1e9   : > { %1668 = vmatprep.subr.bf16.mxu1 %v1459_v8 }
 0x1ea   : > { %1669 = vmatpush1.bf16.msra.mxu1 %v1458_v7 }
 0x1ed   : > { %2591 = vmatmul.mubr.msk.bf16.vlgmr.msra.gmra.mrb[8].mxu1 %vm1506_vm3, %v2722_v9 }
 0x1ee   : > { %1708 = vmatprep.mubr.bf16.mxu1 %v2834_v63 }
 0x1f5   : > { %2592 = vmatmul.mubr.msk.bf16.gmra.mrb[12].mxu1 %vm1506_vm3, %v2723_v10 }
 0x1f6   : > { %1718 = vmatprep.mubr.bf16.mxu1 %v2834_v63 }
 0x1fd   : > { %2593 = vmatmul.mubr.msk.bf16.gmra.mrb[16].mxu1 %vm1506_vm3, %v2724_v11 }
 0x1fe   : > { %1728 = vmatprep.mubr.bf16.mxu1 %v2834_v63 }
 0x205   : > { %2594 = vmatmul.mubr.msk.bf16.gmra.mrb[20].mxu1 %vm1506_vm3, %v2725_v12 }
 0x206   : > { %1738 = vmatprep.mubr.bf16.mxu1 %v2834_v63 }
 0x20d   : > { %2595 = vmatmul.mubr.msk.bf16.gmra.mrb[24].mxu1 %vm1506_vm3, %v2726_v13 }
 0x20e   : > { %1748 = vmatprep.mubr.bf16.mxu1 %v2834_v63 }
 0x215   : > { %2596 = vmatmul.mubr.msk.bf16.gmra.mrb[28].mxu1 %vm1506_vm3, %v2727_v16 }
 0x216   : > { %1967 = vmatprep.mubr.bf16.mxu1 %v2834_v63 }
 0x2c0   : > { %v4050_v17 = vpop.f32.mrb[8].mxu1 }
 0x2c1   : > { %v4052_v18 = vpop.f32.mrb[9].mxu1 }
 0x2c2   : > { %v4054_v19 = vpop.f32.mrb[10].mxu1 }
 0x2c3   : > { %v4056_v20 = vpop.f32.mrb[11].mxu1 }
 0x2c8   : > { %v4058_v21 = vpop.f32.mrb[12].mxu1 }
 0x2c9   : > { %v4060_v22 = vpop.f32.mrb[13].mxu1 }
 0x2ca   : > { %v4062_v23 = vpop.f32.mrb[14].mxu1 }
 0x2cb   : > { %v4064_v24 = vpop.f32.mrb[15].mxu1 }
 0x2d0   : > { %v1720_v41 = vpop.f32.mrb[16].mxu1 }
 0x2d1   : > { %v1791_v60 = vadd.f32 %v1767_v25, %v1720_v41  ;;  %v1722_v30 = vpop.f32.mrb[17].mxu1 }
 0x2d2   : > { %v1792_v34 = vadd.f32 %v1768_v26, %v1722_v30  ;;  %v1724_v35 = vpop.f32.mrb[18].mxu1 }
 0x2d3   : > { %v2605_v36 = vmul.f32 -1.442695, %v1791_v60  ;;  %v1793_v37 = vadd.f32 %v1769_v27, %v1724_v35  ;;  %v1726_v62 = vpop.f32.mrb[19].mxu1 }
 0x2d4   : > { %v2606_v61 = vmul.f32 -1.442695, %v1792_v34  ;;  %v1794_v0 = vadd.f32 %v1770_v33, %v1726_v62 }
 0x2d5   : > { %v2607_v38 = vmul.f32 -1.442695, %v1793_v37  ;;  %2730 = vpow2.f32 %v2605_v36 }
 0x2d6   : > { %v2608_v39 = vmul.f32 -1.442695, %v1794_v0  ;;  %2732 = vpow2.f32 %v2606_v61 }
 0x2d7   : > { %2734 = vpow2.f32 %v2607_v38 }
 0x2d8   : > { %v1730_v45 = vpop.f32.mrb[20].mxu1  ;;  %2736 = vpow2.f32 %v2608_v39 }
 0x2d9   : > { %v1795_v47 = vadd.f32 %v1771_v40, %v1730_v45  ;;  %v1732_v48 = vpop.f32.mrb[21].mxu1 }
 0x2da   : > { %v1796_v50 = vadd.f32 %v1772_v44, %v1732_v48  ;;  %v1734_v51 = vpop.f32.mrb[22].mxu1  ;;  %v2728_v48 = vld [vmem:[%s4209_s3 + $0x60] sm:$0xff]  }
 0x2db   : > { %v2609_v52 = vmul.f32 -1.442695, %v1795_v47  ;;  %v1797_v53 = vadd.f32 %v1773_v46, %v1734_v51  ;;  %v1736_v54 = vpop.f32.mrb[23].mxu1  ;;  %v1760_v51 = vld [vmem:[%s4210_s4 + $0x8] sm:$0xff] }
 0x2dc   : > { %v2610_v55 = vmul.f32 -1.442695, %v1796_v50  ;;  %v1798_v56 = vadd.f32 %v1774_v49, %v1736_v54  ;;  %v2729_v49 = vld [vmem:[%s4209_s3 + $0x68] sm:$0xff]   ;;  %v1759_v50 = vld [vmem:[%s4210_s4] sm:$0xff]  ;;  %v1784_v54 = vadd.f32 %v1760_v51, %v4052_v18  ;;  %v1781_v51 = vld [vmem:[%s4210_s4 + $0xb0] sm:$0xff] }
 0x2dd   : > { %v2611_v57 = vmul.f32 -1.442695, %v1797_v53  ;;  %2738 = vpow2.f32 %v2609_v52  ;;  %v1761_v52 = vld [vmem:[%s4210_s4 + $0x10] sm:$0xff]  ;;  %v1762_v53 = vld [vmem:[%s4210_s4 + $0x18] sm:$0xff] }
 0x2de   : > { %v2612_v58 = vmul.f32 -1.442695, %v1798_v56  ;;  %2740 = vpow2.f32 %v2610_v55  ;;  %v1763_v55 = vld [vmem:[%s4210_s4 + $0x20] sm:$0xff]  ;;  %v1785_v56 = vadd.f32 %v1761_v52, %v4054_v19 }
 0x2df   : > { %v2731_v59 = vpop.eup %2730  ;;  %2742 = vpow2.f32 %v2611_v57  ;;  %v1764_v57 = vld [vmem:[%s4210_s4 + $0x28] sm:$0xff] }
 0x2e0   : > { %v2733_v1 = vpop.eup %2732  ;;  %v1879_v2 = vadd.f32 1.0, %v2731_v59  ;;  %2744 = vpow2.f32 %v2612_v58  ;;  %v1786_v58 = vadd.f32 %v1762_v53, %v4056_v20 }
 0x2e1   : > { %v2735_v3 = vpop.eup %2734  ;;  %v1880_v4 = vadd.f32 1.0, %v2733_v1  ;;  %v2598_v1 = vmul.f32 -1.442695, %v1784_v54  ;;  %v1782_v54 = vld [vmem:[%s4210_s4 + $0xb8] sm:$0xff] }
 0x2e2   : > { %v2737_v5 = vpop.eup %2736  ;;  %2746 = vrcp.f32 %v1879_v2  ;;  %v1881_v6 = vadd.f32 1.0, %v2735_v3  ;;  %v1788_v2 = vadd.f32 %v1764_v57, %v4060_v22  ;;  %v2599_v3 = vmul.f32 -1.442695, %v1785_v56 }
 0x2e3   : > { %2748 = vrcp.f32 %v1880_v4  ;;  %v1882_v7 = vadd.f32 1.0, %v2737_v5  ;;  %v2600_v18 = vmul.f32 -1.442695, %v1786_v58  ;;  %v1765_v4 = vld [vmem:[%s4210_s4 + $0x30] sm:$0xff]  ;;  %v1766_v5 = vld [vmem:[%s4210_s4 + $0x38] sm:$0xff] }
 0x2e4   : > { %2750 = vrcp.f32 %v1881_v6  ;;  %v2602_v20 = vmul.f32 -1.442695, %v1788_v2  ;;  %v1790_v22 = vadd.f32 %v1766_v5, %v4064_v24 }
 0x2e5   : > { %2752 = vrcp.f32 %v1882_v7 }
 0x2e6   : > { %v2604_v7 = vmul.f32 -1.442695, %v1790_v22 }
 0x2e7   : > { %v2739_v8 = vpop.eup %2738 }
 0x2e8   : > { %v2741_v9 = vpop.eup %2740  ;;  %v1883_v10 = vadd.f32 1.0, %v2739_v8 }
 0x2e9   : > { %v2743_v11 = vpop.eup %2742  ;;  %v1884_v12 = vadd.f32 1.0, %v2741_v9 }
 0x2ea   : > { %v2745_v13 = vpop.eup %2744  ;;  %2754 = vrcp.f32 %v1883_v10  ;;  %v1885_v16 = vadd.f32 1.0, %v2743_v11 }
 0x2eb   : > { %2756 = vrcp.f32 %v1884_v12  ;;  %v1886_v25 = vadd.f32 1.0, %v2745_v13 }
 0x2ec   : > { %v2747_v26 = vpop.eup %2746  ;;  %2758 = vrcp.f32 %v1885_v16 }
 0x2ed   : > { %v2749_v41 = vpop.eup %2748  ;;  %2760 = vrcp.f32 %v1886_v25  ;;  %v1907_v30 = vmul.f32 %v2747_v26, %v3790_v28 }
 0x2ee   : > { %v2751_v27 = vpop.eup %2750  ;;  %v1908_v34 = vmul.f32 %v2749_v41, %v3736_v14 }
 0x2ef   : > { %v2753_v60 = vpop.eup %2752  ;;  %v1909_v33 = vmul.f32 %v2751_v27, %v3793_v29  ;;  %v1775_v27 = vld [vmem:[%s4210_s4 + $0x80] sm:$0xff] }
 0x2f0   : > { %v1910_v35 = vmul.f32 %v2753_v60, %v3739_v15  ;;  %v1776_v60 = vld [vmem:[%s4210_s4 + $0x88] sm:$0xff] }
 0x2f1   : > { %v1915_v36 = vpack.c.bf16 %v1909_v33, %v1907_v30 }
 0x2f2   : > { %v1916_v37 = vpack.c.bf16 %v1910_v35, %v1908_v34  ;;  %v1777_v34 = vld [vmem:[%s4210_s4 + $0x90] sm:$0xff] }
 0x2f4   : > { %v2755_v62 = vpop.eup %2754  ;;  %1935 = vmatprep.subr.bf16.mxu1 %v1916_v37 }
 0x2f5   : > { %v2757_v61 = vpop.eup %2756  ;;  %1936 = vmatpush1.bf16.msra.mxu1 %v1915_v36  ;;  %v1911_v39 = vmul.f32 %v2755_v62, %v3833_v42  ;;  %v1778_v62 = vld [vmem:[%s4210_s4 + $0x98] sm:$0xff] }
 0x2f6   : > { %v2759_v0 = vpop.eup %2758  ;;  %v1912_v44 = vmul.f32 %v2757_v61, %v3799_v31 }
 0x2f7   : > { %v2761_v38 = vpop.eup %2760  ;;  %v1913_v40 = vmul.f32 %v2759_v0, %v3836_v43 }
 0x2f8   : > { %v1914_v45 = vmul.f32 %v2761_v38, %v3802_v32 }
 0x2f9   : > { %v1917_v46 = vpack.c.bf16 %v1913_v40, %v1911_v39 }
 0x2fa   : > { %v1918_v47 = vpack.c.bf16 %v1914_v45, %v1912_v44 }
 0x2fc   : > { %1937 = vmatprep.subr.bf16.mxu1 %v1918_v47 }
 0x2fd   : > { %1938 = vmatpush1.bf16.msra.mxu1 %v1917_v46  ;;  %v1779_v46 = vld [vmem:[%s4210_s4 + $0xa0] sm:$0xff] }
 0x300   : > { %2615 = vmatmul.mubr.msk.bf16.vlgmr.msra.gmra.mrb[24].mxu1 %vm1506_vm3, %v2728_v48  ;;  %v1780_v48 = vld [vmem:[%s4210_s4 + $0xa8] sm:$0xff] }
 0x301   : > { %1977 = vmatprep.mubr.bf16.mxu1 %v2834_v63  ;;  %v1783_v63 = vadd.f32 %v1759_v50, %v4050_v17  ;;  %v1787_v17 = vadd.f32 %v1763_v55, %v4058_v21  ;;  %v1789_v21 = vadd.f32 %v1765_v4, %v4062_v23 }
 0x303   : > { %v2597_v59 = vmul.f32 -1.442695, %v1783_v63  ;;  %v2601_v19 = vmul.f32 -1.442695, %v1787_v17  ;;  %v2603_v6 = vmul.f32 -1.442695, %v1789_v21 }
 0x305   : > { %2762 = vpow2.f32 %v2597_v59 }
 0x306   : > { %2764 = vpow2.f32 %v2598_v1 }
 0x307   : > { %2766 = vpow2.f32 %v2599_v3 }
 0x308   : > { %2616 = vmatmul.mubr.msk.bf16.gmra.mrb[28].mxu1 %vm1506_vm3, %v2729_v49  ;;  %2768 = vpow2.f32 %v2600_v18 }
 0x309   : > { %2770 = vpow2.f32 %v2601_v19 }
 0x30a   : > { %2772 = vpow2.f32 %v2602_v20 }
 0x30b   : > { %2774 = vpow2.f32 %v2603_v6 }
 0x30c   : > { %2776 = vpow2.f32 %v2604_v7 }
 0x30f   : > { %v2763_v8 = vpop.eup %2762 }
 0x310   : > { %v2765_v9 = vpop.eup %2764  ;;  %v1831_v12 = vadd.f32 1.0, %v2763_v8 }
 0x311   : > { %v2767_v10 = vpop.eup %2766  ;;  %v1832_v16 = vadd.f32 1.0, %v2765_v9 }
 0x312   : > { %v2769_v11 = vpop.eup %2768  ;;  %v1833_v26 = vadd.f32 1.0, %v2767_v10  ;;  %2778 = vrcp.f32 %v1831_v12 }
 0x313   : > { %v2771_v13 = vpop.eup %2770  ;;  %v1834_v41 = vadd.f32 1.0, %v2769_v11  ;;  %2780 = vrcp.f32 %v1832_v16 }
 0x314   : > { %v2773_v25 = vpop.eup %2772  ;;  %v1835_v23 = vadd.f32 1.0, %v2771_v13  ;;  %2782 = vrcp.f32 %v1833_v26 }
 0x315   : > { %v1836_v24 = vadd.f32 1.0, %v2773_v25  ;;  %v2775_v30 = vpop.eup %2774  ;;  %2784 = vrcp.f32 %v1834_v41 }
 0x316   : > { %v2777_v35 = vpop.eup %2776  ;;  %2786 = vrcp.f32 %v1835_v23  ;;  %v1837_v38 = vadd.f32 1.0, %v2775_v30 }
 0x317   : > { %2788 = vrcp.f32 %v1836_v24  ;;  %v1838_v44 = vadd.f32 1.0, %v2777_v35 }
 0x31c   : > { %v2779_v47 = vpop.eup %2778 }
 0x31d   : > { %v2781_v49 = vpop.eup %2780  ;;  %v2004_v56 = vsub.f32 1.0, %v2779_v47 }
 0x31e   : > { %v2783_v52 = vpop.eup %2782  ;;  %v2005_v17 = vsub.f32 1.0, %v2781_v49 }
 0x31f   : > { %v2785_v55 = vpop.eup %2784  ;;  %v2006_v18 = vsub.f32 1.0, %v2783_v52  ;;  %v2012_v21 = vmul.f32 %v2004_v56, %v3790_v28 }
 0x320   : > { %v2787_v59 = vpop.eup %2786  ;;  %v2007_v5 = vsub.f32 1.0, %v2785_v55  ;;  %v2013_v7 = vmul.f32 %v2005_v17, %v3736_v14 }
 0x321   : > { %v2789_v3 = vpop.eup %2788  ;;  %v2014_v11 = vmul.f32 %v2006_v18, %v3793_v29  ;;  %v2008_v23 = vsub.f32 1.0, %v2787_v59 }
 0x322   : > { %v2015_v25 = vmul.f32 %v2007_v5, %v3739_v15  ;;  %v2009_v28 = vsub.f32 1.0, %v2789_v3 }
 0x323   : > { %v2016_v30 = vmul.f32 %v2008_v23, %v3833_v42 }
 0x324   : > { %v2017_v35 = vmul.f32 %v2009_v28, %v3799_v31 }
 0x3d3   : > { %v1969_v33 = vpop.f32.mrb[24].mxu1 }
 0x3d4   : > { %v2633_v36 = vadd.f32 %v1969_v33, %v1775_v27  ;;  %v1971_v37 = vpop.f32.mrb[25].mxu1 }
 0x3d5   : > { %v2634_v61 = vadd.f32 %v1971_v37, %v1776_v60  ;;  %v1973_v0 = vpop.f32.mrb[26].mxu1 }
 0x3d6   : > { %2790 = vtanh.f32 %v2633_v36  ;;  %v2635_v39 = vadd.f32 %v1973_v0, %v1777_v34  ;;  %v1975_v40 = vpop.f32.mrb[27].mxu1 }
 0x3d7   : > { %2792 = vtanh.f32 %v2634_v61  ;;  %v2636_v45 = vadd.f32 %v1975_v40, %v1778_v62 }
 0x3d8   : > { %2794 = vtanh.f32 %v2635_v39 }
 0x3d9   : > { %2796 = vtanh.f32 %v2636_v45 }
 0x3da   : > { %2798 = vrcp.f32 %v1837_v38 }
 0x3db   : > { %2800 = vrcp.f32 %v1838_v44  ;;  %v1979_v50 = vpop.f32.mrb[28].mxu1 }
 0x3dc   : > { %v2637_v63 = vadd.f32 %v1979_v50, %v1779_v46  ;;  %v1981_v53 = vpop.f32.mrb[29].mxu1 }
 0x3dd   : > { %v2638_v57 = vadd.f32 %v1981_v53, %v1780_v48  ;;  %v1983_v58 = vpop.f32.mrb[30].mxu1 }
 0x3de   : > { %2802 = vtanh.f32 %v2637_v63  ;;  %v2639_v1 = vadd.f32 %v1983_v58, %v1781_v51  ;;  %v1985_v2 = vpop.f32.mrb[31].mxu1 }
 0x3df   : > { %2804 = vtanh.f32 %v2638_v57  ;;  %v2640_v4 = vadd.f32 %v1985_v2, %v1782_v54 }
 0x3e0   : > { %v2791_v19 = vpop.eup %2790  ;;  %2806 = vtanh.f32 %v2639_v1 }
 0x3e1   : > { %v2793_v20 = vpop.eup %2792  ;;  %v2020_v22 = vmul.f32 %v2791_v19, %v2779_v47  ;;  %2808 = vtanh.f32 %v2640_v4 }
 0x3e2   : > { %v2795_v6 = vpop.eup %2794  ;;  %v2021_v8 = vmul.f32 %v2793_v20, %v2781_v49 }
 0x3e3   : > { %v2797_v9 = vpop.eup %2796  ;;  %v2028_v10 = vadd.f32 %v2020_v22, %v2012_v21  ;;  %v2022_v12 = vmul.f32 %v2795_v6, %v2783_v52 }
 0x3e4   : > { %v2799_v13 = vpop.eup %2798  ;;  %v2029_v16 = vadd.f32 %v2021_v8, %v2013_v7  ;;  %v2023_v26 = vmul.f32 %v2797_v9, %v2785_v55 }
 0x3e5   : > { %v2801_v41 = vpop.eup %2800  ;;  %2036 = vst [vmem:[%s4168_s8] sm:$0xff] %v2028_v10  ;;  %v2030_v14 = vadd.f32 %v2022_v12, %v2014_v11  ;;  %v2010_v29 = vsub.f32 1.0, %v2799_v13 }
 0x3e6   : > { %2037 = vst [vmem:[%s4168_s8 + $0x8] sm:$0xff] %v2029_v16  ;;  %v2031_v24 = vadd.f32 %v2023_v26, %v2015_v25  ;;  %v2011_v60 = vsub.f32 1.0, %v2801_v41 }
 0x3e7   : > { %2038 = vst [vmem:[%s4168_s8 + $0x10] sm:$0xff] %v2030_v14  ;;  %v2018_v61 = vmul.f32 %v2010_v29, %v3836_v43 }
 0x3e8   : > { %v2803_v27 = vpop.eup %2802  ;;  %2039 = vst [vmem:[%s4168_s8 + $0x18] sm:$0xff] %v2031_v24  ;;  %v2019_v39 = vmul.f32 %v2011_v60, %v3802_v32 }
 0x3e9   : > { %v2805_v15 = vpop.eup %2804  ;;  %v2024_v33 = vmul.f32 %v2803_v27, %v2787_v59 }
 0x3ea   : > { %v2807_v34 = vpop.eup %2806  ;;  %v2025_v36 = vmul.f32 %v2805_v15, %v2789_v3  ;;  %2050 = sbr.rel (!%p2900_p5) target bundleno = 1017 (0x3f9), region = 90 }
 0x3eb   : > { %v2809_v37 = vpop.eup %2808  ;;  %v2032_v62 = vadd.f32 %v2024_v33, %v2016_v30  ;;  %v2026_v0 = vmul.f32 %v2807_v34, %v2799_v13 }
 0x3ec   : > { %v2033_v38 = vadd.f32 %v2025_v36, %v2017_v35  ;;  %v2027_v40 = vmul.f32 %v2809_v37, %v2801_v41  ;;  %v2066_v31 = vld [vmem:[%s4168_s8] sm:$0xff] (%p2900_p5) }
 0x3ed   : > { %2040 = vst [vmem:[%s4168_s8 + $0x20] sm:$0xff] %v2032_v62  ;;  %v2034_v44 = vadd.f32 %v2026_v0, %v2018_v61  ;;  %v2068_v32 = vld [vmem:[%s4168_s8 + $0x8] sm:$0xff] (%p2900_p5)  ;;  %2067 = vst [vmem:[%s2053_s11] sm:$0xff] (%p2900_p5), %v2066_v31 }
 0x3ee   : > { %2041 = vst [vmem:[%s4168_s8 + $0x28] sm:$0xff] %v2033_v38  ;;  %v2035_v42 = vadd.f32 %v2027_v40, %v2019_v39  ;;  %v2070_v43 = vld [vmem:[%s4168_s8 + $0x10] sm:$0xff] (%p2900_p5)  ;;  %2069 = vst [vmem:[%s2053_s11 + $0x8] sm:$0xff] (%p2900_p5), %v2068_v32 }
 0x3ef   : > { %2042 = vst [vmem:[%s4168_s8 + $0x30] sm:$0xff] %v2034_v44  ;;  %v2072_v45 = vld [vmem:[%s4168_s8 + $0x18] sm:$0xff] (%p2900_p5)  ;;  %2071 = vst [vmem:[%s2053_s11 + $0x20] sm:$0xff] (%p2900_p5), %v2070_v43 }
 0x3f0   : > { %2043 = vst [vmem:[%s4168_s8 + $0x38] sm:$0xff] %v2035_v42  ;;  %2073 = vst [vmem:[%s2053_s11 + $0x28] sm:$0xff] (%p2900_p5), %v2072_v45 }
 0x3f4   : > { %v2074_v46 = vld [vmem:[%s4168_s8 + $0x20] sm:$0xff] }
 0x3f5   : > { %v2076_v47 = vld [vmem:[%s4168_s8 + $0x28] sm:$0xff]  ;;  %2075 = vst [vmem:[%s2053_s11 + $0x40] sm:$0xff] %v2074_v46 }
 0x3f6   : > { %2077 = vst [vmem:[%s2053_s11 + $0x48] sm:$0xff] %v2076_v47  ;;  %v2078_v48 = vld [vmem:[%s4168_s8 + $0x30] sm:$0xff] }
 0x3f7   : > { %v2080_v49 = vld [vmem:[%s4168_s8 + $0x38] sm:$0xff]  ;;  %2079 = vst [vmem:[%s2053_s11 + $0x60] sm:$0xff] %v2078_v48 }
 0x3f8   : > { %2081 = vst [vmem:[%s2053_s11 + $0x68] sm:$0xff] %v2080_v49 }
 0x3f9 PF: > { %p12_p11 = scmp.ge.s32.totalorder %s2884_s22, 4   ;;  %s4268_s18 = smov %s2828_s19 }
 0x3fa   : > { %s4269_s19 = smov %s2894_s25  ;;  %s4270_s20 = smov %s2884_s22 }
 0x3fb   :  { %14 = sbr.rel (!%p12_p11) target bundleno = 2 (0x2), region = 156 }

</bundles_post_ra>
